<compile_context>
chip_gen: v7x
topology: tpu7x:2x2x1
jax: 0.10.0
libtpu: 0.0.40
codegen_flags: <defaults>
</compile_context>

<pallas_src>
import functools
import math

import jax
import jax.numpy as jnp
from jax import lax
from jax.experimental import pallas as pl
from jax.experimental.pallas import tpu as pltpu


# ----------------------------- helpers --------------------------------------

def _pick_tile(n, cap):
    """Largest divisor of n that is <= cap (n itself if n <= cap)."""
    if n <= cap:
        return n
    t = cap
    while n % t:
        t -= 1
    return t


# ----------------------- tiled linear: x @ W^T -------------------------------

def _matmul_kernel(x_ref, w_ref, o_ref, acc_ref):
    @pl.when(pl.program_id(2) == 0)
    def _():
        acc_ref[...] = jnp.zeros_like(acc_ref)

    acc_ref[...] += jnp.dot(x_ref[...], w_ref[...],
                            preferred_element_type=jnp.float32)

    @pl.when(pl.program_id(2) == pl.num_programs(2) - 1)
    def _():
        o_ref[...] = acc_ref[...].astype(o_ref.dtype)


def pallas_linear(x2d, wt, *, out_dtype=None, tm=256, tn=256, tk=512):
    """x2d: (M, K), wt: (K, N) pre-transposed weight (bf16).  Returns (M, N)."""
    M, K = x2d.shape
    N = wt.shape[1]
    tm, tn, tk = _pick_tile(M, tm), _pick_tile(N, tn), _pick_tile(K, tk)
    out_dtype = out_dtype or x2d.dtype
    return pl.pallas_call(
        _matmul_kernel,
        out_shape=jax.ShapeDtypeStruct((M, N), out_dtype),
        grid_spec=pltpu.PrefetchScalarGridSpec(
            num_scalar_prefetch=0,
            grid=(M // tm, N // tn, K // tk),
            in_specs=[
                pl.BlockSpec((tm, tk), lambda i, j, k: (i, k)),
                pl.BlockSpec((tk, tn), lambda i, j, k: (k, j)),
            ],
            out_specs=pl.BlockSpec((tm, tn), lambda i, j, k: (i, j)),
            scratch_shapes=[pltpu.VMEM((tm, tn), jnp.float32)],
        ),
        compiler_params=pltpu.CompilerParams(
            dimension_semantics=("parallel", "parallel", "arbitrary")),
    )(x2d, wt)


# ------------------- flash attention with GQA KV sharing ---------------------

def _flash_attn_kernel(q_ref, k_ref, v_ref, mask_ref, o_ref,
                       m_ref, l_ref, acc_ref, *, rep, head_dim, scale):
    ki = pl.program_id(3)

    @pl.when(ki == 0)
    def _():
        m_ref[...] = jnp.full(m_ref.shape, -jnp.inf, dtype=m_ref.dtype)
        l_ref[...] = jnp.zeros_like(l_ref)
        acc_ref[...] = jnp.zeros_like(acc_ref)

    q = q_ref[0]          # (tq, rep*head_dim) bf16 — `rep` query heads packed
    k = k_ref[0, 0]       # (tk, head_dim)     bf16 — shared GQA KV head
    v = v_ref[0, 0]       # (tk, head_dim)     bf16
    mask = mask_ref[...]  # (tq, tk)           f32 additive mask (stays f32)

    for r in range(rep):  # static unroll over query heads sharing this KV head
        q_r = q[:, r * head_dim:(r + 1) * head_dim]               # (tq, D)
        s = lax.dot_general(q_r, k, (((1,), (1,)), ((), ())),
                            preferred_element_type=jnp.float32)    # (tq, tk)
        s = s * scale + mask

        m_prev = m_ref[r]                                          # (tq, 1)
        m_new = jnp.maximum(m_prev, jnp.max(s, axis=-1, keepdims=True))
        alpha = jnp.exp(m_prev - m_new)
        p = jnp.exp(s - m_new)                                     # (tq, tk)
        l_ref[r] = alpha * l_ref[r] + jnp.sum(p, axis=-1, keepdims=True)
        pv = lax.dot_general(p.astype(v.dtype), v, (((1,), (0,)), ((), ())),
                             preferred_element_type=jnp.float32)   # (tq, D)
        acc_ref[r] = alpha * acc_ref[r] + pv
        m_ref[r] = m_new

    @pl.when(ki == pl.num_programs(3) - 1)
    def _():
        outs = []
        for r in range(rep):
            inv = pl.reciprocal(l_ref[r], approx=True)             # (tq, 1)
            outs.append(acc_ref[r] * inv)
        # single lane-dense store directly in (bsz, seqlen, dim) layout
        o_ref[0] = jnp.concatenate(outs, axis=-1).astype(o_ref.dtype)


def pallas_flash_attention(q, k, v, mask, *, n_head, n_local_heads, head_dim,
                           tq=128, tk=256):
    """q: (B, S, n_head*D) projection layout; k, v: (B, n_local_heads, S, D);
    mask: (S, S) additive f32.  Returns (B, S, n_head*D)."""
    bsz, S, dim = q.shape
    rep = n_head // n_local_heads
    gdim = rep * head_dim
    assert dim == n_head * head_dim
    # Direct lane-dense writes into (B, S, dim) require a 128-multiple slab.
    assert gdim % 128 == 0 or n_local_heads == 1, (
        "rep*head_dim must be a multiple of 128 (or n_local_heads == 1)")
    tq = _pick_tile(S, tq)
    tk = _pick_tile(S, tk)
    scale = 1.0 / math.sqrt(head_dim)

    kernel = functools.partial(_flash_attn_kernel, rep=rep,
                               head_dim=head_dim, scale=scale)
    grid = (bsz, n_local_heads, S // tq, S // tk)

    return pl.pallas_call(
        kernel,
        out_shape=jax.ShapeDtypeStruct((bsz, S, dim), q.dtype),
        grid_spec=pltpu.PrefetchScalarGridSpec(
            num_scalar_prefetch=0,
            grid=grid,
            in_specs=[
                # Q: packed group of `rep` heads, straight from projection layout
                pl.BlockSpec((1, tq, gdim), lambda b, g, qi, ki: (b, qi, g)),
                # K/V: shared KV head selected by the grid's `g` axis (no repeat)
                pl.BlockSpec((1, 1, tk, head_dim),
                             lambda b, g, qi, ki: (b, g, ki, 0)),
                pl.BlockSpec((1, 1, tk, head_dim),
                             lambda b, g, qi, ki: (b, g, ki, 0)),
                pl.BlockSpec((tq, tk), lambda b, g, qi, ki: (qi, ki)),
            ],
            out_specs=pl.BlockSpec((1, tq, gdim), lambda b, g, qi, ki: (b, qi, g)),
            scratch_shapes=[
                pltpu.VMEM((rep, tq, 1), jnp.float32),         # running max m
                pltpu.VMEM((rep, tq, 1), jnp.float32),         # running sum l
                pltpu.VMEM((rep, tq, head_dim), jnp.float32),  # output accum
            ],
        ),
        compiler_params=pltpu.CompilerParams(
            dimension_semantics=("parallel", "parallel", "parallel", "arbitrary")),
    )(q, k, v, mask)


# ------------------------------ JAX glue -------------------------------------

def apply_rotary_emb(x, freqs_cis):
    """x: (B, S, H, D), freqs_cis: (S, D//2, 2). Matches the PyTorch version."""
    B, S, H, D = x.shape
    xs = x.astype(jnp.float32).reshape(B, S, H, D // 2, 2)
    fc = freqs_cis.reshape(1, S, 1, D // 2, 2)
    xr, xi = xs[..., 0], xs[..., 1]
    cr, ci = fc[..., 0], fc[..., 1]
    out = jnp.stack([xr * cr - xi * ci, xi * cr + xr * ci], axis=-1)
    return out.reshape(B, S, H, D).astype(x.dtype)


def precompute_freqs_cis(seq_len, head_dim, base=40000.0):
    inv_freq = 1.0 / (base ** (jnp.arange(0, head_dim, 2, dtype=jnp.float32) / head_dim))
    t = jnp.arange(seq_len, dtype=jnp.float32)
    angles = jnp.outer(t, inv_freq)                                # (S, D//2)
    return jnp.stack([jnp.cos(angles), jnp.sin(angles)], axis=-1)  # (S, D//2, 2)


def attention_forward(x, freqs_cis, mask1, wqkv_t, wo_t, *,
                      n_head, n_local_heads, head_dim):
    """x: (B, S, dim) f32; wqkv_t: (dim, total_head_dim) bf16 (pre-transposed);
    wo_t: (dim, dim) bf16 (pre-transposed)."""
    bsz, seqlen, dim = x.shape
    kv_size = n_local_heads * head_dim

    # fused QKV projection (tiled bf16 MXU matmul, f32 accumulation)
    xb = x.astype(jnp.bfloat16)
    qkv = pallas_linear(xb.reshape(bsz * seqlen, dim), wqkv_t,
                        out_dtype=jnp.bfloat16)
    qkv = qkv.reshape(bsz, seqlen, -1)
    q, k, v = jnp.split(qkv, [dim, dim + kv_size], axis=-1)

    q = apply_rotary_emb(q.reshape(bsz, seqlen, n_head, head_dim), freqs_cis)
    k = apply_rotary_emb(k.reshape(bsz, seqlen, n_local_heads, head_dim), freqs_cis)
    v = v.reshape(bsz, seqlen, n_local_heads, head_dim)

    # Q stays in projection layout (B, S, n_head*D): no transpose needed.
    q = q.reshape(bsz, seqlen, dim)
    # K/V: (B, n_local_heads, S, D); GQA replication handled by the index_map.
    k = jnp.transpose(k, (0, 2, 1, 3))
    v = jnp.transpose(v, (0, 2, 1, 3))

    # flash attention; output comes back already in (B, S, dim) layout.
    y = pallas_flash_attention(q, k, v, mask1, n_head=n_head,
                               n_local_heads=n_local_heads, head_dim=head_dim)

    # output projection
    out = pallas_linear(y.reshape(bsz * seqlen, dim), wo_t,
                        out_dtype=jnp.float32)
    return out.reshape(bsz, seqlen, dim)


# --------------------------- reference (pure JAX, f32) ------------------------

def attention_reference(x, freqs_cis, mask1, wqkv, wo,
                        n_head, n_local_heads, head_dim):
    bsz, seqlen, dim = x.shape
    kv_size = n_local_heads * head_dim
    qkv = x.reshape(bsz * seqlen, dim) @ wqkv.T
    qkv = qkv.reshape(bsz, seqlen, -1)
    q, k, v = jnp.split(qkv, [dim, dim + kv_size], axis=-1)
    q = apply_rotary_emb(q.reshape(bsz, seqlen, n_head, head_dim), freqs_cis)
    k = apply_rotary_emb(k.reshape(bsz, seqlen, n_local_heads, head_dim), freqs_cis)
    v = v.reshape(bsz, seqlen, n_local_heads, head_dim)
    q, k, v = (jnp.transpose(t, (0, 2, 1, 3)) for t in (q, k, v))
    rep = n_head // n_local_heads
    k = jnp.repeat(k, rep, axis=1)
    v = jnp.repeat(v, rep, axis=1)
    s = jnp.einsum("bhqd,bhkd->bhqk", q, k) / math.sqrt(head_dim)
    s = s + mask1[None, None]
    p = jax.nn.softmax(s.astype(jnp.float32), axis=-1)
    y = jnp.einsum("bhqk,bhkd->bhqd", p, v)
    y = jnp.transpose(y, (0, 2, 1, 3)).reshape(bsz, seqlen, dim)
    return (y.reshape(bsz * seqlen, dim) @ wo.T).reshape(bsz, seqlen, dim)


# --------------------------------- main --------------------------------------

if __name__ == "__main__":
    # small config consistent with ModelArgs: head_dim = dim // n_head
    bsz, seqlen = 2, 16
    n_head, n_local_heads, head_dim = 4, 2, 64
    dim = n_head * head_dim                                     # 256
    total_head_dim = (n_head + 2 * n_local_heads) * head_dim    # 512

    key = jax.random.PRNGKey(0)
    k_x, k_wqkv, k_wo = jax.random.split(key, 3)

    x = jax.random.normal(k_x, (bsz, seqlen, dim), dtype=jnp.float32)
    wqkv = jax.random.normal(k_wqkv, (total_head_dim, dim), dtype=jnp.float32) * 0.02
    wo = jax.random.normal(k_wo, (dim, dim), dtype=jnp.float32) * 0.02

    freqs_cis = precompute_freqs_cis(seqlen, head_dim, base=40000.0)

    # causal additive mask (the `mask1` argument of forward) — kept in f32
    causal = jnp.tril(jnp.ones((seqlen, seqlen), dtype=bool))
    mask1 = jnp.where(causal, 0.0, -1e30).astype(jnp.float32)

    # Pre-transpose + bf16-cast the weights ONCE, outside the hot path.
    wqkv_t = wqkv.T.astype(jnp.bfloat16)
    wo_t = wo.T.astype(jnp.bfloat16)

    fwd = jax.jit(functools.partial(attention_forward,
                                    n_head=n_head,
                                    n_local_heads=n_local_heads,
                                    head_dim=head_dim))
    y = jax.block_until_ready(fwd(x, freqs_cis, mask1, wqkv_t, wo_t))

    y_ref = attention_reference(x, freqs_cis, mask1, wqkv, wo,
                                n_head, n_local_heads, head_dim)
    assert y.shape == (bsz, seqlen, dim)
    err = float(jnp.max(jnp.abs(y - y_ref)))
    assert jnp.allclose(y, y_ref, atol=2e-2, rtol=2e-2), f"max abs err {err}"

    print("KERNEL_OK")
</pallas_src>

<mosaic_0001>
module attributes {stable_mosaic.version = 11 : i64} {
  func.func @_matmul_kernel(%arg0: i32, %arg1: i32, %arg2: i32, %arg3: memref<32x256xbf16, #tpu.memory_space<vmem>>, %arg4: memref<256x256xbf16, #tpu.memory_space<vmem>>, %arg5: memref<32x256xbf16, #tpu.memory_space<vmem>>, %arg6: memref<32x256xf32, #tpu.memory_space<vmem>>) attributes {dimension_semantics = [#tpu.dimension_semantics<parallel>, #tpu.dimension_semantics<parallel>, #tpu.dimension_semantics<arbitrary>], iteration_bounds = array<i64: 1, 2, 1>, scalar_prefetch = 0 : i64, scratch_operands = 1 : i64, tpu.core_type = #tpu.core_type<tc>, window_params = [{transform_indices = @transform_0, window_bounds = array<i64: 32, 256>}, {transform_indices = @transform_1, window_bounds = array<i64: 256, 256>}, {transform_indices = @transform_2, window_bounds = array<i64: 32, 256>}]} {
    %c0_i32 = arith.constant 0 : i32
    %0 = arith.cmpi eq, %arg2, %c0_i32 : i32
    %1 = arith.extui %0 : i1 to i32
    %c0_i32_0 = arith.constant 0 : i32
    %2 = arith.cmpi ne, %1, %c0_i32_0 : i32
    scf.if %2 {
      %cst_10 = arith.constant 0.000000e+00 : f32
      %12 = vector.broadcast %cst_10 : f32 to vector<32x256xf32>
      %c0_11 = arith.constant 0 : index
      %c0_12 = arith.constant 0 : index
      %13 = vector.load %arg6[%c0_11, %c0_12] : memref<32x256xf32, #tpu.memory_space<vmem>>, vector<32x256xf32>
      tpu.vector_store %arg6[%c0_11, %c0_12], %12 {strides = array<i32>} : memref<32x256xf32, #tpu.memory_space<vmem>>, vector<32x256xf32>,
    } else {
    }
    %c0 = arith.constant 0 : index
    %c0_1 = arith.constant 0 : index
    %3 = vector.load %arg6[%c0, %c0_1] : memref<32x256xf32, #tpu.memory_space<vmem>>, vector<32x256xf32>
    %c0_2 = arith.constant 0 : index
    %c0_3 = arith.constant 0 : index
    %4 = vector.load %arg3[%c0_2, %c0_3] : memref<32x256xbf16, #tpu.memory_space<vmem>>, vector<32x256xbf16>
    %c0_4 = arith.constant 0 : index
    %c0_5 = arith.constant 0 : index
    %5 = vector.load %arg4[%c0_4, %c0_5] : memref<256x256xbf16, #tpu.memory_space<vmem>>, vector<256x256xbf16>
    %cst = arith.constant dense<0.000000e+00> : vector<32x256xf32>
    %6 = tpu.matmul %4, %5, %cst {dimension_numbers = #tpu.dot_dimension_numbers<[1], [0], [0], [1], [0, 0, 1, 1], [], []>} : vector<32x256xbf16>, vector<256x256xbf16>, vector<32x256xf32> -> vector<32x256xf32>
    %7 = arith.addf %3, %6 : vector<32x256xf32>
    %c0_6 = arith.constant 0 : index
    %c0_7 = arith.constant 0 : index
    %8 = vector.load %arg6[%c0_6, %c0_7] : memref<32x256xf32, #tpu.memory_space<vmem>>, vector<32x256xf32>
    tpu.vector_store %arg6[%c0_6, %c0_7], %7 {strides = array<i32>} : memref<32x256xf32, #tpu.memory_space<vmem>>, vector<32x256xf32>,
    %c0_i32_8 = arith.constant 0 : i32
    %9 = arith.cmpi eq, %arg2, %c0_i32_8 : i32
    %10 = arith.extui %9 : i1 to i32
    %c0_i32_9 = arith.constant 0 : i32
    %11 = arith.cmpi ne, %10, %c0_i32_9 : i32
    scf.if %11 {
      %c0_10 = arith.constant 0 : index
      %c0_11 = arith.constant 0 : index
      %12 = vector.load %arg6[%c0_10, %c0_11] : memref<32x256xf32, #tpu.memory_space<vmem>>, vector<32x256xf32>
      %13 = arith.truncf %12 : vector<32x256xf32> to vector<32x256xbf16>
      %c0_12 = arith.constant 0 : index
      %c0_13 = arith.constant 0 : index
      %14 = vector.load %arg5[%c0_12, %c0_13] : memref<32x256xbf16, #tpu.memory_space<vmem>>, vector<32x256xbf16>
      tpu.vector_store %arg5[%c0_12, %c0_13], %13 {strides = array<i32>} : memref<32x256xbf16, #tpu.memory_space<vmem>>, vector<32x256xbf16>,
    } else {
    }
    return
  }
  func.func @transform_0(%arg0: i32, %arg1: i32, %arg2: i32) -> (i32, i32) {
    %c0_i32 = arith.constant 0 : i32
    return %arg0, %arg2 : i32, i32
  }
  func.func @transform_1(%arg0: i32, %arg1: i32, %arg2: i32) -> (i32, i32) {
    %c0_i32 = arith.constant 0 : i32
    return %arg2, %arg1 : i32, i32
  }
  func.func @transform_2(%arg0: i32, %arg1: i32, %arg2: i32) -> (i32, i32) {
    %c0_i32 = arith.constant 0 : i32
    return %arg0, %arg1 : i32, i32
  }
}

module attributes {stable_mosaic.version = 11 : i64} {
  func.func @_flash_attn_kernel(%arg0: i32, %arg1: i32, %arg2: i32, %arg3: i32, %arg4: memref<1x16x128xbf16, #tpu.memory_space<vmem>>, %arg5: memref<1x1x16x64xbf16, #tpu.memory_space<vmem>>, %arg6: memref<1x1x16x64xbf16, #tpu.memory_space<vmem>>, %arg7: memref<16x16xf32, #tpu.memory_space<vmem>>, %arg8: memref<1x16x128xbf16, #tpu.memory_space<vmem>>, %arg9: memref<2x16x1xf32, #tpu.memory_space<vmem>>, %arg10: memref<2x16x1xf32, #tpu.memory_space<vmem>>, %arg11: memref<2x16x64xf32, #tpu.memory_space<vmem>>) attributes {dimension_semantics = [#tpu.dimension_semantics<parallel>, #tpu.dimension_semantics<parallel>, #tpu.dimension_semantics<parallel>, #tpu.dimension_semantics<arbitrary>], iteration_bounds = array<i64: 2, 2, 1, 1>, scalar_prefetch = 0 : i64, scratch_operands = 3 : i64, tpu.core_type = #tpu.core_type<tc>, window_params = [{transform_indices = @transform_0, window_bounds = array<i64: 1, 16, 128>}, {transform_indices = @transform_1, window_bounds = array<i64: 1, 1, 16, 64>}, {transform_indices = @transform_2, window_bounds = array<i64: 1, 1, 16, 64>}, {transform_indices = @transform_3, window_bounds = array<i64: 16, 16>}, {transform_indices = @transform_4, window_bounds = array<i64: 1, 16, 128>}]} {
    %c0_i32 = arith.constant 0 : i32
    %0 = arith.cmpi eq, %arg3, %c0_i32 : i32
    %1 = arith.extui %0 : i1 to i32
    %c0_i32_0 = arith.constant 0 : i32
    %2 = arith.cmpi ne, %1, %c0_i32_0 : i32
    scf.if %2 {
      %cst_59 = arith.constant 0xFF800000 : f32
      %87 = vector.broadcast %cst_59 : f32 to vector<2x16x1xf32>
      %c0_60 = arith.constant 0 : index
      %c0_61 = arith.constant 0 : index
      %c0_62 = arith.constant 0 : index
      %88 = vector.load %arg9[%c0_60, %c0_61, %c0_62] : memref<2x16x1xf32, #tpu.memory_space<vmem>>, vector<2x16x1xf32>
      tpu.vector_store %arg9[%c0_60, %c0_61, %c0_62], %87 {strides = array<i32>} : memref<2x16x1xf32, #tpu.memory_space<vmem>>, vector<2x16x1xf32>,
      %cst_63 = arith.constant 0.000000e+00 : f32
      %89 = vector.broadcast %cst_63 : f32 to vector<2x16x1xf32>
      %c0_64 = arith.constant 0 : index
      %c0_65 = arith.constant 0 : index
      %c0_66 = arith.constant 0 : index
      %90 = vector.load %arg10[%c0_64, %c0_65, %c0_66] : memref<2x16x1xf32, #tpu.memory_space<vmem>>, vector<2x16x1xf32>
      tpu.vector_store %arg10[%c0_64, %c0_65, %c0_66], %89 {strides = array<i32>} : memref<2x16x1xf32, #tpu.memory_space<vmem>>, vector<2x16x1xf32>,
      %cst_67 = arith.constant 0.000000e+00 : f32
      %91 = vector.broadcast %cst_67 : f32 to vector<2x16x64xf32>
      %c0_68 = arith.constant 0 : index
      %c0_69 = arith.constant 0 : index
      %c0_70 = arith.constant 0 : index
      %92 = vector.load %arg11[%c0_68, %c0_69, %c0_70] : memref<2x16x64xf32, #tpu.memory_space<vmem>>, vector<2x16x64xf32>
      tpu.vector_store %arg11[%c0_68, %c0_69, %c0_70], %91 {strides = array<i32>} : memref<2x16x64xf32, #tpu.memory_space<vmem>>, vector<2x16x64xf32>,
    } else {
    }
    %c0 = arith.constant 0 : index
    %c0_1 = arith.constant 0 : index
    %c0_2 = arith.constant 0 : index
    %3 = vector.load %arg4[%c0, %c0_1, %c0_2] : memref<1x16x128xbf16, #tpu.memory_space<vmem>>, vector<1x16x128xbf16>
    %4 = vector.shape_cast %3 : vector<1x16x128xbf16> to vector<16x128xbf16>
    %c0_3 = arith.constant 0 : index
    %c0_4 = arith.constant 0 : index
    %c0_5 = arith.constant 0 : index
    %c0_6 = arith.constant 0 : index
    %5 = vector.load %arg5[%c0_3, %c0_4, %c0_5, %c0_6] : memref<1x1x16x64xbf16, #tpu.memory_space<vmem>>, vector<1x1x16x64xbf16>
    %6 = vector.shape_cast %5 : vector<1x1x16x64xbf16> to vector<16x64xbf16>
    %c0_7 = arith.constant 0 : index
    %c0_8 = arith.constant 0 : index
    %c0_9 = arith.constant 0 : index
    %c0_10 = arith.constant 0 : index
    %7 = vector.load %arg6[%c0_7, %c0_8, %c0_9, %c0_10] : memref<1x1x16x64xbf16, #tpu.memory_space<vmem>>, vector<1x1x16x64xbf16>
    %8 = vector.shape_cast %7 : vector<1x1x16x64xbf16> to vector<16x64xbf16>
    %c0_11 = arith.constant 0 : index
    %c0_12 = arith.constant 0 : index
    %9 = vector.load %arg7[%c0_11, %c0_12] : memref<16x16xf32, #tpu.memory_space<vmem>>, vector<16x16xf32>
    %10 = vector.extract_strided_slice %4 {offsets = [0, 0], sizes = [16, 64], strides = [1, 1]} : vector<16x128xbf16> to vector<16x64xbf16>
    %cst = arith.constant dense<0.000000e+00> : vector<16x16xf32>
    %11 = tpu.matmul %10, %6, %cst {dimension_numbers = #tpu.dot_dimension_numbers<[1], [1], [0], [0], [0, 0, 1, 0], [], []>} : vector<16x64xbf16>, vector<16x64xbf16>, vector<16x16xf32> -> vector<16x16xf32>
    %cst_13 = arith.constant 1.250000e-01 : f32
    %12 = vector.broadcast %cst_13 : f32 to vector<16x16xf32>
    %13 = arith.mulf %11, %12 : vector<16x16xf32>
    %14 = arith.addf %13, %9 : vector<16x16xf32>
    %c0_14 = arith.constant 0 : index
    %c0_15 = arith.constant 0 : index
    %c0_16 = arith.constant 0 : index
    %15 = vector.load %arg9[%c0_14, %c0_15, %c0_16] : memref<2x16x1xf32, #tpu.memory_space<vmem>>, vector<1x16x1xf32>
    %16 = vector.shape_cast %15 : vector<1x16x1xf32> to vector<16x1xf32>
    %cst_17 = arith.constant dense<0xFF800000> : vector<16xf32>
    %17 = vector.multi_reduction <maximumf>, %14, %cst_17 [1] : vector<16x16xf32> to vector<16xf32>
    %18 = vector.shape_cast %17 : vector<16xf32> to vector<16x1xf32>
    %19 = arith.maximumf %16, %18 : vector<16x1xf32>
    %20 = arith.subf %16, %19 : vector<16x1xf32>
    %21 = math.exp %20 : vector<16x1xf32>
    %22 = vector.broadcast %19 : vector<16x1xf32> to vector<16x16xf32>
    %23 = arith.subf %14, %22 : vector<16x16xf32>
    %24 = math.exp %23 : vector<16x16xf32>
    %c0_18 = arith.constant 0 : index
    %c0_19 = arith.constant 0 : index
    %c0_20 = arith.constant 0 : index
    %25 = vector.load %arg10[%c0_18, %c0_19, %c0_20] : memref<2x16x1xf32, #tpu.memory_space<vmem>>, vector<1x16x1xf32>
    %26 = vector.shape_cast %25 : vector<1x16x1xf32> to vector<16x1xf32>
    %27 = arith.mulf %21, %26 : vector<16x1xf32>
    %cst_21 = arith.constant dense<0.000000e+00> : vector<16xf32>
    %28 = vector.multi_reduction <add>, %24, %cst_21 [1] : vector<16x16xf32> to vector<16xf32>
    %29 = vector.shape_cast %28 : vector<16xf32> to vector<16x1xf32>
    %30 = arith.addf %27, %29 : vector<16x1xf32>
    %c0_22 = arith.constant 0 : index
    %c0_23 = arith.constant 0 : index
    %c0_24 = arith.constant 0 : index
    %31 = vector.load %arg10[%c0_22, %c0_23, %c0_24] : memref<2x16x1xf32, #tpu.memory_space<vmem>>, vector<1x16x1xf32>
    %32 = vector.shape_cast %31 : vector<1x16x1xf32> to vector<16x1xf32>
    %33 = vector.shape_cast %30 : vector<16x1xf32> to vector<1x16x1xf32>
    tpu.vector_store %arg10[%c0_22, %c0_23, %c0_24], %33 {strides = array<i32>} : memref<2x16x1xf32, #tpu.memory_space<vmem>>, vector<1x16x1xf32>,
    %34 = arith.truncf %24 : vector<16x16xf32> to vector<16x16xbf16>
    %cst_25 = arith.constant dense<0.000000e+00> : vector<16x64xf32>
    %35 = tpu.matmul %34, %8, %cst_25 {dimension_numbers = #tpu.dot_dimension_numbers<[1], [0], [0], [1], [0, 0, 1, 1], [], []>} : vector<16x16xbf16>, vector<16x64xbf16>, vector<16x64xf32> -> vector<16x64xf32>
    %c0_26 = arith.constant 0 : index
    %c0_27 = arith.constant 0 : index
    %c0_28 = arith.constant 0 : index
    %36 = vector.load %arg11[%c0_26, %c0_27, %c0_28] : memref<2x16x64xf32, #tpu.memory_space<vmem>>, vector<1x16x64xf32>
    %37 = vector.shape_cast %36 : vector<1x16x64xf32> to vector<16x64xf32>
    %38 = vector.broadcast %21 : vector<16x1xf32> to vector<16x64xf32>
    %39 = arith.mulf %38, %37 : vector<16x64xf32>
    %40 = arith.addf %39, %35 : vector<16x64xf32>
    %c0_29 = arith.constant 0 : index
    %c0_30 = arith.constant 0 : index
    %c0_31 = arith.constant 0 : index
    %41 = vector.load %arg11[%c0_29, %c0_30, %c0_31] : memref<2x16x64xf32, #tpu.memory_space<vmem>>, vector<1x16x64xf32>
    %42 = vector.shape_cast %41 : vector<1x16x64xf32> to vector<16x64xf32>
    %43 = vector.shape_cast %40 : vector<16x64xf32> to vector<1x16x64xf32>
    tpu.vector_store %arg11[%c0_29, %c0_30, %c0_31], %43 {strides = array<i32>} : memref<2x16x64xf32, #tpu.memory_space<vmem>>, vector<1x16x64xf32>,
    %c0_32 = arith.constant 0 : index
    %c0_33 = arith.constant 0 : index
    %c0_34 = arith.constant 0 : index
    %44 = vector.load %arg9[%c0_32, %c0_33, %c0_34] : memref<2x16x1xf32, #tpu.memory_space<vmem>>, vector<1x16x1xf32>
    %45 = vector.shape_cast %44 : vector<1x16x1xf32> to vector<16x1xf32>
    %46 = vector.shape_cast %19 : vector<16x1xf32> to vector<1x16x1xf32>
    tpu.vector_store %arg9[%c0_32, %c0_33, %c0_34], %46 {strides = array<i32>} : memref<2x16x1xf32, #tpu.memory_space<vmem>>, vector<1x16x1xf32>,
    %47 = vector.extract_strided_slice %4 {offsets = [0, 64], sizes = [16, 64], strides = [1, 1]} : vector<16x128xbf16> to vector<16x64xbf16>
    %cst_35 = arith.constant dense<0.000000e+00> : vector<16x16xf32>
    %48 = tpu.matmul %47, %6, %cst_35 {dimension_numbers = #tpu.dot_dimension_numbers<[1], [1], [0], [0], [0, 0, 1, 0], [], []>} : vector<16x64xbf16>, vector<16x64xbf16>, vector<16x16xf32> -> vector<16x16xf32>
    %cst_36 = arith.constant 1.250000e-01 : f32
    %49 = vector.broadcast %cst_36 : f32 to vector<16x16xf32>
    %50 = arith.mulf %48, %49 : vector<16x16xf32>
    %51 = arith.addf %50, %9 : vector<16x16xf32>
    %c1 = arith.constant 1 : index
    %c0_37 = arith.constant 0 : index
    %c0_38 = arith.constant 0 : index
    %52 = vector.load %arg9[%c1, %c0_37, %c0_38] : memref<2x16x1xf32, #tpu.memory_space<vmem>>, vector<1x16x1xf32>
    %53 = vector.shape_cast %52 : vector<1x16x1xf32> to vector<16x1xf32>
    %cst_39 = arith.constant dense<0xFF800000> : vector<16xf32>
    %54 = vector.multi_reduction <maximumf>, %51, %cst_39 [1] : vector<16x16xf32> to vector<16xf32>
    %55 = vector.shape_cast %54 : vector<16xf32> to vector<16x1xf32>
    %56 = arith.maximumf %53, %55 : vector<16x1xf32>
    %57 = arith.subf %53, %56 : vector<16x1xf32>
    %58 = math.exp %57 : vector<16x1xf32>
    %59 = vector.broadcast %56 : vector<16x1xf32> to vector<16x16xf32>
    %60 = arith.subf %51, %59 : vector<16x16xf32>
    %61 = math.exp %60 : vector<16x16xf32>
    %c1_40 = arith.constant 1 : index
    %c0_41 = arith.constant 0 : index
    %c0_42 = arith.constant 0 : index
    %62 = vector.load %arg10[%c1_40, %c0_41, %c0_42] : memref<2x16x1xf32, #tpu.memory_space<vmem>>, vector<1x16x1xf32>
    %63 = vector.shape_cast %62 : vector<1x16x1xf32> to vector<16x1xf32>
    %64 = arith.mulf %58, %63 : vector<16x1xf32>
    %cst_43 = arith.constant dense<0.000000e+00> : vector<16xf32>
    %65 = vector.multi_reduction <add>, %61, %cst_43 [1] : vector<16x16xf32> to vector<16xf32>
    %66 = vector.shape_cast %65 : vector<16xf32> to vector<16x1xf32>
    %67 = arith.addf %64, %66 : vector<16x1xf32>
    %c1_44 = arith.constant 1 : index
    %c0_45 = arith.constant 0 : index
    %c0_46 = arith.constant 0 : index
    %68 = vector.load %arg10[%c1_44, %c0_45, %c0_46] : memref<2x16x1xf32, #tpu.memory_space<vmem>>, vector<1x16x1xf32>
    %69 = vector.shape_cast %68 : vector<1x16x1xf32> to vector<16x1xf32>
    %70 = vector.shape_cast %67 : vector<16x1xf32> to vector<1x16x1xf32>
    tpu.vector_store %arg10[%c1_44, %c0_45, %c0_46], %70 {strides = array<i32>} : memref<2x16x1xf32, #tpu.memory_space<vmem>>, vector<1x16x1xf32>,
    %71 = arith.truncf %61 : vector<16x16xf32> to vector<16x16xbf16>
    %cst_47 = arith.constant dense<0.000000e+00> : vector<16x64xf32>
    %72 = tpu.matmul %71, %8, %cst_47 {dimension_numbers = #tpu.dot_dimension_numbers<[1], [0], [0], [1], [0, 0, 1, 1], [], []>} : vector<16x16xbf16>, vector<16x64xbf16>, vector<16x64xf32> -> vector<16x64xf32>
    %c1_48 = arith.constant 1 : index
    %c0_49 = arith.constant 0 : index
    %c0_50 = arith.constant 0 : index
    %73 = vector.load %arg11[%c1_48, %c0_49, %c0_50] : memref<2x16x64xf32, #tpu.memory_space<vmem>>, vector<1x16x64xf32>
    %74 = vector.shape_cast %73 : vector<1x16x64xf32> to vector<16x64xf32>
    %75 = vector.broadcast %58 : vector<16x1xf32> to vector<16x64xf32>
    %76 = arith.mulf %75, %74 : vector<16x64xf32>
    %77 = arith.addf %76, %72 : vector<16x64xf32>
    %c1_51 = arith.constant 1 : index
    %c0_52 = arith.constant 0 : index
    %c0_53 = arith.constant 0 : index
    %78 = vector.load %arg11[%c1_51, %c0_52, %c0_53] : memref<2x16x64xf32, #tpu.memory_space<vmem>>, vector<1x16x64xf32>
    %79 = vector.shape_cast %78 : vector<1x16x64xf32> to vector<16x64xf32>
    %80 = vector.shape_cast %77 : vector<16x64xf32> to vector<1x16x64xf32>
    tpu.vector_store %arg11[%c1_51, %c0_52, %c0_53], %80 {strides = array<i32>} : memref<2x16x64xf32, #tpu.memory_space<vmem>>, vector<1x16x64xf32>,
    %c1_54 = arith.constant 1 : index
    %c0_55 = arith.constant 0 : index
    %c0_56 = arith.constant 0 : index
    %81 = vector.load %arg9[%c1_54, %c0_55, %c0_56] : memref<2x16x1xf32, #tpu.memory_space<vmem>>, vector<1x16x1xf32>
    %82 = vector.shape_cast %81 : vector<1x16x1xf32> to vector<16x1xf32>
    %83 = vector.shape_cast %56 : vector<16x1xf32> to vector<1x16x1xf32>
    tpu.vector_store %arg9[%c1_54, %c0_55, %c0_56], %83 {strides = array<i32>} : memref<2x16x1xf32, #tpu.memory_space<vmem>>, vector<1x16x1xf32>,
    %c0_i32_57 = arith.constant 0 : i32
    %84 = arith.cmpi eq, %arg3, %c0_i32_57 : i32
    %85 = arith.extui %84 : i1 to i32
    %c0_i32_58 = arith.constant 0 : i32
    %86 = arith.cmpi ne, %85, %c0_i32_58 : i32
    scf.if %86 {
      %c0_59 = arith.constant 0 : index
      %c0_60 = arith.constant 0 : index
      %c0_61 = arith.constant 0 : index
      %87 = vector.load %arg10[%c0_59, %c0_60, %c0_61] : memref<2x16x1xf32, #tpu.memory_space<vmem>>, vector<1x16x1xf32>
      %88 = vector.shape_cast %87 : vector<1x16x1xf32> to vector<16x1xf32>
      %89 = tpu.reciprocal %88 {approx = true} : vector<16x1xf32> -> vector<16x1xf32>
      %c0_62 = arith.constant 0 : index
      %c0_63 = arith.constant 0 : index
      %c0_64 = arith.constant 0 : index
      %90 = vector.load %arg11[%c0_62, %c0_63, %c0_64] : memref<2x16x64xf32, #tpu.memory_space<vmem>>, vector<1x16x64xf32>
      %91 = vector.shape_cast %90 : vector<1x16x64xf32> to vector<16x64xf32>
      %92 = vector.broadcast %89 : vector<16x1xf32> to vector<16x64xf32>
      %93 = arith.mulf %91, %92 : vector<16x64xf32>
      %c1_65 = arith.constant 1 : index
      %c0_66 = arith.constant 0 : index
      %c0_67 = arith.constant 0 : index
      %94 = vector.load %arg10[%c1_65, %c0_66, %c0_67] : memref<2x16x1xf32, #tpu.memory_space<vmem>>, vector<1x16x1xf32>
      %95 = vector.shape_cast %94 : vector<1x16x1xf32> to vector<16x1xf32>
      %96 = tpu.reciprocal %95 {approx = true} : vector<16x1xf32> -> vector<16x1xf32>
      %c1_68 = arith.constant 1 : index
      %c0_69 = arith.constant 0 : index
      %c0_70 = arith.constant 0 : index
      %97 = vector.load %arg11[%c1_68, %c0_69, %c0_70] : memref<2x16x64xf32, #tpu.memory_space<vmem>>, vector<1x16x64xf32>
      %98 = vector.shape_cast %97 : vector<1x16x64xf32> to vector<16x64xf32>
      %99 = vector.broadcast %96 : vector<16x1xf32> to vector<16x64xf32>
      %100 = arith.mulf %98, %99 : vector<16x64xf32>
      %101 = tpu.concatenate %93, %100 in 1 : vector<16x64xf32>, vector<16x64xf32> -> vector<16x128xf32>
      %102 = arith.truncf %101 : vector<16x128xf32> to vector<16x128xbf16>
      %c0_71 = arith.constant 0 : index
      %c0_72 = arith.constant 0 : index
      %c0_73 = arith.constant 0 : index
      %103 = vector.load %arg8[%c0_71, %c0_72, %c0_73] : memref<1x16x128xbf16, #tpu.memory_space<vmem>>, vector<1x16x128xbf16>
      %104 = vector.shape_cast %103 : vector<1x16x128xbf16> to vector<16x128xbf16>
      %105 = vector.shape_cast %102 : vector<16x128xbf16> to vector<1x16x128xbf16>
      tpu.vector_store %arg8[%c0_71, %c0_72, %c0_73], %105 {strides = array<i32>} : memref<1x16x128xbf16, #tpu.memory_space<vmem>>, vector<1x16x128xbf16>,
    } else {
    }
    return
  }
  func.func @transform_0(%arg0: i32, %arg1: i32, %arg2: i32, %arg3: i32) -> (i32, i32, i32) {
    %c0_i32 = arith.constant 0 : i32
    return %arg0, %arg2, %arg1 : i32, i32, i32
  }
  func.func @transform_1(%arg0: i32, %arg1: i32, %arg2: i32, %arg3: i32) -> (i32, i32, i32, i32) {
    %c0_i32 = arith.constant 0 : i32
    %c0_i32_0 = arith.constant 0 : i32
    return %arg0, %arg1, %arg3, %c0_i32 : i32, i32, i32, i32
  }
  func.func @transform_2(%arg0: i32, %arg1: i32, %arg2: i32, %arg3: i32) -> (i32, i32, i32, i32) {
    %c0_i32 = arith.constant 0 : i32
    %c0_i32_0 = arith.constant 0 : i32
    return %arg0, %arg1, %arg3, %c0_i32 : i32, i32, i32, i32
  }
  func.func @transform_3(%arg0: i32, %arg1: i32, %arg2: i32, %arg3: i32) -> (i32, i32) {
    %c0_i32 = arith.constant 0 : i32
    return %arg2, %arg3 : i32, i32
  }
  func.func @transform_4(%arg0: i32, %arg1: i32, %arg2: i32, %arg3: i32) -> (i32, i32, i32) {
    %c0_i32 = arith.constant 0 : i32
    return %arg0, %arg2, %arg1 : i32, i32, i32
  }
}

module attributes {stable_mosaic.version = 11 : i64} {
  func.func @_matmul_kernel(%arg0: i32, %arg1: i32, %arg2: i32, %arg3: memref<32x256xbf16, #tpu.memory_space<vmem>>, %arg4: memref<256x256xbf16, #tpu.memory_space<vmem>>, %arg5: memref<32x256xf32, #tpu.memory_space<vmem>>, %arg6: memref<32x256xf32, #tpu.memory_space<vmem>>) attributes {dimension_semantics = [#tpu.dimension_semantics<parallel>, #tpu.dimension_semantics<parallel>, #tpu.dimension_semantics<arbitrary>], iteration_bounds = array<i64: 1, 1, 1>, scalar_prefetch = 0 : i64, scratch_operands = 1 : i64, tpu.core_type = #tpu.core_type<tc>, window_params = [{transform_indices = @transform_0, window_bounds = array<i64: 32, 256>}, {transform_indices = @transform_1, window_bounds = array<i64: 256, 256>}, {transform_indices = @transform_2, window_bounds = array<i64: 32, 256>}]} {
    %c0_i32 = arith.constant 0 : i32
    %0 = arith.cmpi eq, %arg2, %c0_i32 : i32
    %1 = arith.extui %0 : i1 to i32
    %c0_i32_0 = arith.constant 0 : i32
    %2 = arith.cmpi ne, %1, %c0_i32_0 : i32
    scf.if %2 {
      %cst_10 = arith.constant 0.000000e+00 : f32
      %12 = vector.broadcast %cst_10 : f32 to vector<32x256xf32>
      %c0_11 = arith.constant 0 : index
      %c0_12 = arith.constant 0 : index
      %13 = vector.load %arg6[%c0_11, %c0_12] : memref<32x256xf32, #tpu.memory_space<vmem>>, vector<32x256xf32>
      tpu.vector_store %arg6[%c0_11, %c0_12], %12 {strides = array<i32>} : memref<32x256xf32, #tpu.memory_space<vmem>>, vector<32x256xf32>,
    } else {
    }
    %c0 = arith.constant 0 : index
    %c0_1 = arith.constant 0 : index
    %3 = vector.load %arg6[%c0, %c0_1] : memref<32x256xf32, #tpu.memory_space<vmem>>, vector<32x256xf32>
    %c0_2 = arith.constant 0 : index
    %c0_3 = arith.constant 0 : index
    %4 = vector.load %arg3[%c0_2, %c0_3] : memref<32x256xbf16, #tpu.memory_space<vmem>>, vector<32x256xbf16>
    %c0_4 = arith.constant 0 : index
    %c0_5 = arith.constant 0 : index
    %5 = vector.load %arg4[%c0_4, %c0_5] : memref<256x256xbf16, #tpu.memory_space<vmem>>, vector<256x256xbf16>
    %cst = arith.constant dense<0.000000e+00> : vector<32x256xf32>
    %6 = tpu.matmul %4, %5, %cst {dimension_numbers = #tpu.dot_dimension_numbers<[1], [0], [0], [1], [0, 0, 1, 1], [], []>} : vector<32x256xbf16>, vector<256x256xbf16>, vector<32x256xf32> -> vector<32x256xf32>
    %7 = arith.addf %3, %6 : vector<32x256xf32>
    %c0_6 = arith.constant 0 : index
    %c0_7 = arith.constant 0 : index
    %8 = vector.load %arg6[%c0_6, %c0_7] : memref<32x256xf32, #tpu.memory_space<vmem>>, vector<32x256xf32>
    tpu.vector_store %arg6[%c0_6, %c0_7], %7 {strides = array<i32>} : memref<32x256xf32, #tpu.memory_space<vmem>>, vector<32x256xf32>,
    %c0_i32_8 = arith.constant 0 : i32
    %9 = arith.cmpi eq, %arg2, %c0_i32_8 : i32
    %10 = arith.extui %9 : i1 to i32
    %c0_i32_9 = arith.constant 0 : i32
    %11 = arith.cmpi ne, %10, %c0_i32_9 : i32
    scf.if %11 {
      %c0_10 = arith.constant 0 : index
      %c0_11 = arith.constant 0 : index
      %12 = vector.load %arg6[%c0_10, %c0_11] : memref<32x256xf32, #tpu.memory_space<vmem>>, vector<32x256xf32>
      %c0_12 = arith.constant 0 : index
      %c0_13 = arith.constant 0 : index
      %13 = vector.load %arg5[%c0_12, %c0_13] : memref<32x256xf32, #tpu.memory_space<vmem>>, vector<32x256xf32>
      tpu.vector_store %arg5[%c0_12, %c0_13], %12 {strides = array<i32>} : memref<32x256xf32, #tpu.memory_space<vmem>>, vector<32x256xf32>,
    } else {
    }
    return
  }
  func.func @transform_0(%arg0: i32, %arg1: i32, %arg2: i32) -> (i32, i32) {
    %c0_i32 = arith.constant 0 : i32
    return %arg0, %arg2 : i32, i32
  }
  func.func @transform_1(%arg0: i32, %arg1: i32, %arg2: i32) -> (i32, i32) {
    %c0_i32 = arith.constant 0 : i32
    return %arg2, %arg1 : i32, i32
  }
  func.func @transform_2(%arg0: i32, %arg1: i32, %arg2: i32) -> (i32, i32) {
    %c0_i32 = arith.constant 0 : i32
    return %arg0, %arg1 : i32, i32
  }
}

</mosaic_0001>

<bundles_post_ra>
// kernel: attention_forward.3
= control target key start
LH: loop header
LB: loop body
LE: loop exit
PB: predicated region body
PF: predicated region fallthrough
CT: control target
= control target key end

     0   :  { %7 = vsyncpa [#allocation4], 0  ;;  %s1219_s0 = inlined_call_operand.vmem [shape: bf16[32,256], index: 0, kind: input, shape index: {}]   ;;  %s1220_s1 = inlined_call_operand.hbm [shape: bf16[256,512], index: 1, kind: input, shape index: {}]   ;;  %s1221_s2 = inlined_call_operand.vmem [shape: bf16[32,512], index: 2, kind: output, shape index: {}]  }
   0x1   :  { %9 = vsyncpa [#allocation4 + $0x1], 0  ;;  %s1037_s9 = smov 0   ;;  %s1039_s10 = smov 0  }
   0x2   :  { %s1041_s11 = smov 0   ;;  %s1043_s12 = smov 0  }
   0x3   :  { %s1045_s13 = smov 0   ;;  %s1047_s14 = smov 0  }
   0x4 LB: > { %s730_s15 = sadd.s32 4294967295, %s1016_s14   ;;  %s30_s16 = sadd.s32 1, %s1012_s13  ;;  %s1016_s14 = sphi %s1047_s14, %s15_s14   ;;  %s1012_s13 = sphi %s1045_s13, %s1232_s13   ;;  %s1008_s12 = sphi %s1043_s12, %s1231_s12   ;;  %s1004_s11 = sphi %s1041_s11, %s1230_s11   ;;  %s1000_s10 = sphi %s1039_s10, %s1229_s10   ;;  %s996_s9 = sphi %s1037_s9, %s1228_s9  }
   0x5   : > { %p32_p0 = scmp.ge.s32.totalorder %s30_s16, 2  ;;  %s71_s17 = sadd.s32 1, %s1004_s11 }
   0x6   : > { %p78_p1 = scmp.ne.s32.totalorder %s1004_s11, %s1000_s10  ;;  %p79_p2 = scmp.eq.s32.totalorder %s1016_s14, 0 }
   0x7   : > { %s1234_s16 = smov (%p32_p0, %s30_s16), 0  ;;  %p84_p4 = scmp.ne.s32.totalorder %s1000_s10, %s996_s9 }
   0x8   : > { %p1073_p3 = por %p79_p2, %p78_p1  ;;  %s67_s19 = ssub.s32 %s1012_s13, %s1234_s16 }
   0x9   : > { %p85_p5 = scmp.eq.s32.totalorder %s730_s15, 0  ;;  %p69_p6 = scmp.eq.s32.totalorder %s67_s19, 0 }
   0xa   : > { %p110_p7 = scmp.eq.s32.totalorder %s730_s15, 1  ;;  %p830_p10 = scmp.lt.s32.totalorder %s1016_s14, 2 }
   0xb   : > { %p1080_p8 = por %p85_p5, %p84_p4  ;;  %s151_s23 = sand.u32 1, %s1004_s11  }
   0xc   : > { %s1085_s21 = scalar_select %p69_p6, %s1004_s11, %s71_s17  }
   0xd   : > { %p1087_p9 = por %p110_p7, %p78_p1  ;;  %s786_s24 = sshll.u32 %s1012_s13, 7 }
   0xe   : > { %s735_s25 = sshll.u32 %s151_s23, 8  ;;  %s1097_s28 = scalar_lea.hbm %s1220_s1, %s786_s24 }
   0xf   : > { %s1224_s22 = scalar_select %p1087_p9, 1, 0 }
  0x10   : > { %s155_s29 = scalar_lea.vmem [#allocation3], %s735_s25  ;;  %p1101_p11 = pnand %p830_p10, %p1073_p3 }
  0x11   : > { %s165_s30 = sshll.u32 %s155_s29, 4  ;;  %s1108_s4 = scalar_lea.sflag [#allocation4], %s151_s23  ;;  %s1105_s30 = int_to_ptr.vmem [resolvable:$true] %s165_s30 }
  0x12   : > { %s936_s5 = scalar_lea.hbm %s1097_s28, 4096  ;;  %p938_p0 = pneg %p1101_p11 }
  0x13   : > { %p937_p13 = scmp.ne.s32.totalorder %s1097_s28, %s936_s5  ;;  %s941_s8 = scalar_lea.hbm %s1220_s1, 8192 }
  0x14   : > { %p942_p3 = scmp.lt.u32.totalorder %s1097_s28, %s1220_s1  ;;  %p943_p4 = scmp.lt.u32.totalorder %s941_s8, %s936_s5 }
  0x15   : > { %p939_p1 = pnand %p938_p0, %p937_p13  ;;  %p945_p6 = scmp.lt.u32.totalorder %s936_s5, %s1097_s28 }
  0x16   : > { %p944_p5 = por %p943_p4, %p942_p3 }
  0x17   : > { %p940_p2 = pneg %p939_p1 }
  0x18   : > { %p946_p7 = por %p945_p6, %p944_p5 }
  0x1a   : > { %p947_p10 = pnand %p946_p7, %p940_p2 }
  0x1c   : > { %950 = shalt.err (!%p947_p10)
}
  0x1d   : > { %s951_s17 = scalar_lea.vmem %s1105_s30, 4096  ;;  %s1018_s18 = smov [#allocation3]  }
  0x1e   : > { %p952_p13 = scmp.ne.s32.totalorder %s1105_s30, %s951_s17  ;;  %s956_s19 = sshll.u32 %s1018_s18, 4  ;;  %s957_s19 = int_to_ptr.vmem [resolvable:$false] %s956_s19 }
  0x1f   : > { %s958_s23 = scalar_lea.vmem %s957_s19, 8192  ;;  %p959_p9 = scmp.lt.s32.totalorder %s1105_s30, %s957_s19 }
  0x20   : > { %p954_p1 = pnand %p952_p13, %p938_p0  ;;  %p960_p3 = scmp.lt.s32.totalorder %s958_s23, %s951_s17 }
  0x22   : > { %p955_p12 = pneg %p954_p1  ;;  %p961_p4 = por %p960_p3, %p959_p9 }
  0x24   : > { %p962_p5 = pnand %p961_p4, %p955_p12 }
  0x26   : > { %965 = shalt.err (!%p962_p5)
}
  0x27   : > { %s1019_s24 = smov 256   ;;  %s1020_s25 = smov 128  }
  0x28   : > { %s1021_s26 = smov 8   ;;  %p173_p0 = scmp.lt.s32.totalorder %s1016_s14, 3 }
  0x29   : > { %829 = dma.hbm_to_vmem [thread:$0]  (!%p1101_p11), %s1097_s28, 4096, %s1105_s30, %s1108_s4, %s1019_s24, %s1020_s25, %s1021_s26  }
  0x2a   : > { %p1226_p2 = scmp.ge.s32.totalorder %s1016_s14, 1 }
  0x2c   : > { %p174_p6 = pnand %p1226_p2, %p173_p0 }
  0x2d   : > { %s1140_s27 = sand.u32 (!%p174_p6), 1, %s1000_s10  }
  0x2e   : > { %177 = sbr.rel (%p174_p6) target bundleno = 345 (0x159), region = 28  ;;  %s739_s29 = sshll.u32 (!%p174_p6), %s1140_s27, 8 }
  0x2f   : > { %s180_s5 = scalar_lea.sflag (!%p174_p6), [#allocation4], %s1140_s27  ;;  %s1144_s6 = scalar_lea.vmem (!%p174_p6), [#allocation3], %s739_s29 }
  0x35   : > { %991 = dma.done.wait (%p1080_p8), %s180_s5, 4096  }
  0x36   : > { %993 = vsyncadd (%p1080_p8), %s180_s5, 4294963200  ;;  %v882_v0 = vld [vmem:[%s1144_s6 + $0x4] ss:$8 sps:$4 sm:$0xff]   ;;  %v884_v1 = vld [vmem:[%s1144_s6] ss:$8 sps:$4 sm:$0xff]   ;;  %s740_s15 = sshll.u32 %s1140_s27, 5 }
  0x37   : > { %465 = vmatprep.subr.bf16.mxu0 %v882_v0  ;;  %792 = vmatprep.subr.bf16.mxu1 %v882_v0  ;;  %v885_v2 = vld [vmem:[%s1144_s6 + $0x14] ss:$8 sps:$4 sm:$0xff]   ;;  %v887_v3 = vld [vmem:[%s1144_s6 + $0x10] ss:$8 sps:$4 sm:$0xff]   ;;  %v888_v4 = vld [vmem:[%s1144_s6 + $0x24] ss:$8 sps:$4 sm:$0xff]  }
  0x38   : > { %466 = vmatpush1.bf16.msra.mxu0 %v884_v1  ;;  %808 = vmatpush1.bf16.msra.mxu1 %v884_v1  ;;  %v890_v5 = vld [vmem:[%s1144_s6 + $0x20] ss:$8 sps:$4 sm:$0xff]   ;;  %v891_v6 = vld [vmem:[%s1144_s6 + $0x34] ss:$8 sps:$4 sm:$0xff]   ;;  %v893_v7 = vld [vmem:[%s1144_s6 + $0x30] ss:$8 sps:$4 sm:$0xff]  }
  0x39   : > { %467 = vmatprep.subr.bf16.mxu0 %v885_v2  ;;  %793 = vmatprep.subr.bf16.mxu1 %v885_v2  ;;  %v894_v8 = vld [vmem:[%s1144_s6 + $0x44] ss:$8 sps:$4 sm:$0xff]   ;;  %v896_v9 = vld [vmem:[%s1144_s6 + $0x40] ss:$8 sps:$4 sm:$0xff]   ;;  %v897_v10 = vld [vmem:[%s1144_s6 + $0x54] ss:$8 sps:$4 sm:$0xff]  }
  0x3a   : > { %v899_v11 = vld [vmem:[%s1144_s6 + $0x50] ss:$8 sps:$4 sm:$0xff]   ;;  %v900_v12 = vld [vmem:[%s1144_s6 + $0x64] ss:$8 sps:$4 sm:$0xff]   ;;  %v902_v14 = vld [vmem:[%s1144_s6 + $0x60] ss:$8 sps:$4 sm:$0xff]  }
  0x3b   : > { %v932_v13 = vld [vmem:[%s1219_s0 + $0x4] ss:$8 sps:$4 sm:$0xff]   ;;  %v935_v15 = vld [vmem:[%s1219_s0 + $0x14] ss:$8 sps:$4 sm:$0xff]   ;;  %v905_v17 = vld [vmem:[%s1144_s6 + $0x70] ss:$8 sps:$4 sm:$0xff]  }
  0x3c   : > { %468 = vmatpush1.bf16.msra.mxu0 %v887_v3  ;;  %809 = vmatpush1.bf16.msra.mxu1 %v887_v3  ;;  %v903_v16 = vld [vmem:[%s1144_s6 + $0x74] ss:$8 sps:$4 sm:$0xff]   ;;  %v906_v18 = vld [vmem:[%s1144_s6 + $0x84] ss:$8 sps:$4 sm:$0xff]   ;;  %v908_v19 = vld [vmem:[%s1144_s6 + $0x80] ss:$8 sps:$4 sm:$0xff]  }
  0x3d   : > { %469 = vmatprep.subr.bf16.mxu0 %v888_v4  ;;  %794 = vmatprep.subr.bf16.mxu1 %v888_v4  ;;  %v909_v20 = vld [vmem:[%s1144_s6 + $0x94] ss:$8 sps:$4 sm:$0xff]   ;;  %v911_v21 = vld [vmem:[%s1144_s6 + $0x90] ss:$8 sps:$4 sm:$0xff]   ;;  %v912_v22 = vld [vmem:[%s1144_s6 + $0xa4] ss:$8 sps:$4 sm:$0xff]  }
  0x3e   : > { %497 = vmatprep.mubr.bf16.mxu0 %v932_v13  ;;  %507 = vmatprep.mubr.bf16.mxu1 %v935_v15  ;;  %v914_v23 = vld [vmem:[%s1144_s6 + $0xa0] ss:$8 sps:$4 sm:$0xff]   ;;  %v915_v24 = vld [vmem:[%s1144_s6 + $0xb4] ss:$8 sps:$4 sm:$0xff]   ;;  %v917_v25 = vld [vmem:[%s1144_s6 + $0xb0] ss:$8 sps:$4 sm:$0xff]  }
  0x3f   : > { %v918_v26 = vld [vmem:[%s1144_s6 + $0xc4] ss:$8 sps:$4 sm:$0xff]   ;;  %v920_v27 = vld [vmem:[%s1144_s6 + $0xc0] ss:$8 sps:$4 sm:$0xff]   ;;  %v921_v28 = vld [vmem:[%s1144_s6 + $0xd4] ss:$8 sps:$4 sm:$0xff]  }
  0x40   : > { %470 = vmatpush1.bf16.msra.mxu0 %v890_v5  ;;  %810 = vmatpush1.bf16.msra.mxu1 %v890_v5  ;;  %v923_v29 = vld [vmem:[%s1144_s6 + $0xd0] ss:$8 sps:$4 sm:$0xff]   ;;  %v924_v30 = vld [vmem:[%s1144_s6 + $0xe4] ss:$8 sps:$4 sm:$0xff]   ;;  %v926_v31 = vld [vmem:[%s1144_s6 + $0xe0] ss:$8 sps:$4 sm:$0xff]  }
  0x41   : > { %471 = vmatprep.subr.bf16.mxu0 %v891_v6  ;;  %795 = vmatprep.subr.bf16.mxu1 %v891_v6  ;;  %v927_v32 = vld [vmem:[%s1144_s6 + $0xf4] ss:$8 sps:$4 sm:$0xff]   ;;  %v929_v33 = vld [vmem:[%s1144_s6 + $0xf0] ss:$8 sps:$4 sm:$0xff]   ;;  %v930_v34 = vld [vmem:[%s1219_s0] ss:$8 sps:$4 sm:$0xff]  }
  0x42   : > { %v933_v35 = vld [vmem:[%s1219_s0 + $0x10] ss:$8 sps:$4 sm:$0xff]   ;;  %s212_s17 = scalar_lea.vmem [#allocation5], %s740_s15  ;;  %p1227_p8 = scmp.ne.s32.totalorder %s1224_s22, 0 }
  0x43   : > { %s791_s18 = sshll.u32 (%p1227_p8), %s1008_s12, 3 }
  0x44   : > { %472 = vmatpush1.bf16.msra.mxu0 %v893_v7  ;;  %811 = vmatpush1.bf16.msra.mxu1 %v893_v7  ;;  %s585_s24 = scalar_lea.vmem (%p1227_p8), %s1221_s2, %s791_s18 }
  0x45   : > { %473 = vmatprep.subr.bf16.mxu0 %v894_v8  ;;  %796 = vmatprep.subr.bf16.mxu1 %v894_v8 }
  0x48   : > { %474 = vmatpush1.bf16.msra.mxu0 %v896_v9  ;;  %812 = vmatpush1.bf16.msra.mxu1 %v896_v9 }
  0x49   : > { %475 = vmatprep.subr.bf16.mxu0 %v897_v10  ;;  %797 = vmatprep.subr.bf16.mxu1 %v897_v10 }
  0x4c   : > { %476 = vmatpush1.bf16.msra.mxu0 %v899_v11  ;;  %813 = vmatpush1.bf16.msra.mxu1 %v899_v11 }
  0x4d   : > { %477 = vmatprep.subr.bf16.mxu0 %v900_v12  ;;  %798 = vmatprep.subr.bf16.mxu1 %v900_v12 }
  0x50   : > { %478 = vmatpush1.bf16.msra.mxu0 %v902_v14  ;;  %814 = vmatpush1.bf16.msra.mxu1 %v902_v14 }
  0x51   : > { %479 = vmatprep.subr.bf16.mxu0 %v903_v16  ;;  %799 = vmatprep.subr.bf16.mxu1 %v903_v16 }
  0x54   : > { %480 = vmatpush1.bf16.msra.mxu0 %v905_v17  ;;  %815 = vmatpush1.bf16.msra.mxu1 %v905_v17 }
  0x55   : > { %481 = vmatprep.subr.bf16.mxu0 %v906_v18  ;;  %800 = vmatprep.subr.bf16.mxu1 %v906_v18 }
  0x58   : > { %482 = vmatpush1.bf16.msra.mxu0 %v908_v19  ;;  %816 = vmatpush1.bf16.msra.mxu1 %v908_v19 }
  0x59   : > { %483 = vmatprep.subr.bf16.mxu0 %v909_v20  ;;  %801 = vmatprep.subr.bf16.mxu1 %v909_v20 }
  0x5c   : > { %484 = vmatpush1.bf16.msra.mxu0 %v911_v21  ;;  %817 = vmatpush1.bf16.msra.mxu1 %v911_v21 }
  0x5d   : > { %485 = vmatprep.subr.bf16.mxu0 %v912_v22  ;;  %802 = vmatprep.subr.bf16.mxu1 %v912_v22 }
  0x60   : > { %486 = vmatpush1.bf16.msra.mxu0 %v914_v23  ;;  %818 = vmatpush1.bf16.msra.mxu1 %v914_v23 }
  0x61   : > { %487 = vmatprep.subr.bf16.mxu0 %v915_v24  ;;  %803 = vmatprep.subr.bf16.mxu1 %v915_v24 }
  0x64   : > { %488 = vmatpush1.bf16.msra.mxu0 %v917_v25  ;;  %819 = vmatpush1.bf16.msra.mxu1 %v917_v25 }
  0x65   : > { %489 = vmatprep.subr.bf16.mxu0 %v918_v26  ;;  %804 = vmatprep.subr.bf16.mxu1 %v918_v26 }
  0x68   : > { %490 = vmatpush1.bf16.msra.mxu0 %v920_v27  ;;  %820 = vmatpush1.bf16.msra.mxu1 %v920_v27 }
  0x69   : > { %491 = vmatprep.subr.bf16.mxu0 %v921_v28  ;;  %805 = vmatprep.subr.bf16.mxu1 %v921_v28 }
  0x6c   : > { %492 = vmatpush1.bf16.msra.mxu0 %v923_v29  ;;  %821 = vmatpush1.bf16.msra.mxu1 %v923_v29 }
  0x6d   : > { %493 = vmatprep.subr.bf16.mxu0 %v924_v30  ;;  %806 = vmatprep.subr.bf16.mxu1 %v924_v30 }
  0x70   : > { %494 = vmatpush1.bf16.msra.mxu0 %v926_v31  ;;  %822 = vmatpush1.bf16.msra.mxu1 %v926_v31 }
  0x71   : > { %495 = vmatprep.subr.bf16.mxu0 %v927_v32  ;;  %807 = vmatprep.subr.bf16.mxu1 %v927_v32 }
  0x74   : > { %496 = vmatpush1.bf16.msra.mxu0 %v929_v33  ;;  %823 = vmatpush1.bf16.msra.mxu1 %v929_v33 }
  0x77   : > { %498 = vmatmul.mubr.bf16.vlgmr.msra.gmra.mrb[0].mxu0 %v930_v34  ;;  %508 = vmatmul.mubr.bf16.vlgmr.msra.gmra.mrb[0].mxu1 %v933_v35 }
 0x14a   : > { %v499_v36 = vpop.f32.mrb[0].mxu0  ;;  %v509_v37 = vpop.f32.mrb[0].mxu1  ;;  %579 = sbr.rel (!%p1227_p8) target bundleno = 345 (0x159), region = 44 }
 0x14b   : > { %v501_v38 = vpop.f32.mrb[1].mxu0  ;;  %v511_v39 = vpop.f32.mrb[1].mxu1 }
 0x14c   : > { %v787_v40 = vpack.c.bf16 %v501_v38, %v499_v36  ;;  %v789_v41 = vpack.c.bf16 %v511_v39, %v509_v37  ;;  %v503_v42 = vpop.f32.mrb[2].mxu0  ;;  %v513_v43 = vpop.f32.mrb[2].mxu1 }
 0x14d   : > { %v505_v44 = vpop.f32.mrb[3].mxu0  ;;  %v515_v45 = vpop.f32.mrb[3].mxu1 }
 0x14e   : > { %569 = vst [vmem:[%s212_s17] sm:$0xff] %v787_v40  ;;  %571 = vst [vmem:[%s212_s17 + $0x10] sm:$0xff] %v789_v41  ;;  %v788_v46 = vpack.c.bf16 %v505_v44, %v503_v42  ;;  %v790_v47 = vpack.c.bf16 %v515_v45, %v513_v43 }
 0x150   : > { %570 = vst [vmem:[%s212_s17 + $0x8] sm:$0xff] %v788_v46  ;;  %572 = vst [vmem:[%s212_s17 + $0x18] sm:$0xff] %v790_v47 }
 0x155   : > { %v619_v48 = vld [vmem:[%s212_s17] sm:$0xff]  ;;  %v623_v50 = vld [vmem:[%s212_s17 + $0x10] sm:$0xff] }
 0x156   : > { %620 = vst [vmem:[%s585_s24] sm:$0xff] %v619_v48  ;;  %624 = vst [vmem:[%s585_s24 + $0x20] sm:$0xff] %v623_v50 }
 0x157   : > { %v621_v49 = vld [vmem:[%s212_s17 + $0x8] sm:$0xff]  ;;  %v625_v51 = vld [vmem:[%s212_s17 + $0x18] sm:$0xff] }
 0x158   : > { %622 = vst [vmem:[%s585_s24 + $0x10] sm:$0xff] %v621_v49  ;;  %626 = vst [vmem:[%s585_s24 + $0x30] sm:$0xff] %v625_v51 }
 0x159 PF: > { %s15_s14 = sadd.s32 1, %s1016_s14   ;;  %s1228_s9 = smov %s1000_s10 }
 0x15a   : > { %p12_p9 = scmp.ge.s32.totalorder %s15_s14, 4   ;;  %s1229_s10 = smov %s1004_s11 }
 0x15b   : > { %s1230_s11 = smov %s1085_s21  ;;  %s1231_s12 = smov %s1012_s13 }
 0x15c   : > { %s1232_s13 = smov %s1234_s16  ;;  %14 = sbr.rel (!%p12_p9) target bundleno = 4 (0x4), region = 117 }
 0x163   :  { %642 = vsyncpa [#allocation4], 1 }
 0x164   :  { %644 = vsyncpa [#allocation4 + $0x1], 1 }

// kernel: attention_forward.5
= control target key start
LH: loop header
LB: loop body
LE: loop exit
PB: predicated region body
PF: predicated region fallthrough
CT: control target
= control target key end

     0   :  { %s639_s0 = inlined_call_operand.vmem [shape: bf16[32,256], index: 0, kind: input, shape index: {}]   ;;  %s640_s1 = inlined_call_operand.vmem [shape: bf16[256,256], index: 1, kind: input, shape index: {}]   ;;  %s641_s2 = inlined_call_operand.hbm [shape: f32[32,256], index: 2, kind: output, shape index: {}]  }
   0x1   :  { %v423_v0 = vld [vmem:[%s640_s1 + $0x4] ss:$8 sps:$4 sm:$0xff]   ;;  %v425_v1 = vld [vmem:[%s640_s1] ss:$8 sps:$4 sm:$0xff]   ;;  %v426_v2 = vld [vmem:[%s640_s1 + $0x14] ss:$8 sps:$4 sm:$0xff]  }
   0x2   :  { %248 = vmatprep.subr.bf16.mxu0 %v423_v0  ;;  %388 = vmatprep.subr.bf16.mxu1 %v423_v0  ;;  %v428_v3 = vld [vmem:[%s640_s1 + $0x10] ss:$8 sps:$4 sm:$0xff]   ;;  %v429_v4 = vld [vmem:[%s640_s1 + $0x24] ss:$8 sps:$4 sm:$0xff]   ;;  %v431_v5 = vld [vmem:[%s640_s1 + $0x20] ss:$8 sps:$4 sm:$0xff]  }
   0x3   :  { %249 = vmatpush1.bf16.msra.mxu0 %v425_v1  ;;  %404 = vmatpush1.bf16.msra.mxu1 %v425_v1  ;;  %v432_v6 = vld [vmem:[%s640_s1 + $0x34] ss:$8 sps:$4 sm:$0xff]   ;;  %v434_v7 = vld [vmem:[%s640_s1 + $0x30] ss:$8 sps:$4 sm:$0xff]   ;;  %v435_v8 = vld [vmem:[%s640_s1 + $0x44] ss:$8 sps:$4 sm:$0xff]  }
   0x4   :  { %250 = vmatprep.subr.bf16.mxu0 %v426_v2  ;;  %389 = vmatprep.subr.bf16.mxu1 %v426_v2  ;;  %v437_v9 = vld [vmem:[%s640_s1 + $0x40] ss:$8 sps:$4 sm:$0xff]   ;;  %v438_v10 = vld [vmem:[%s640_s1 + $0x54] ss:$8 sps:$4 sm:$0xff]   ;;  %v440_v11 = vld [vmem:[%s640_s1 + $0x50] ss:$8 sps:$4 sm:$0xff]  }
   0x5   :  { %v441_v12 = vld [vmem:[%s640_s1 + $0x64] ss:$8 sps:$4 sm:$0xff]   ;;  %v443_v14 = vld [vmem:[%s640_s1 + $0x60] ss:$8 sps:$4 sm:$0xff]   ;;  %v476_v15 = vld [vmem:[%s639_s0 + $0x14] ss:$8 sps:$4 sm:$0xff]  }
   0x6   :  { %v473_v13 = vld [vmem:[%s639_s0 + $0x4] ss:$8 sps:$4 sm:$0xff]   ;;  %v444_v16 = vld [vmem:[%s640_s1 + $0x74] ss:$8 sps:$4 sm:$0xff]  }
   0x7   :  { %251 = vmatpush1.bf16.msra.mxu0 %v428_v3  ;;  %405 = vmatpush1.bf16.msra.mxu1 %v428_v3 }
   0x8   :  { %252 = vmatprep.subr.bf16.mxu0 %v429_v4  ;;  %390 = vmatprep.subr.bf16.mxu1 %v429_v4 }
   0xb   :  { %253 = vmatpush1.bf16.msra.mxu0 %v431_v5  ;;  %406 = vmatpush1.bf16.msra.mxu1 %v431_v5 }
   0xc   :  { %254 = vmatprep.subr.bf16.mxu0 %v432_v6  ;;  %391 = vmatprep.subr.bf16.mxu1 %v432_v6 }
   0xf   :  { %255 = vmatpush1.bf16.msra.mxu0 %v434_v7  ;;  %407 = vmatpush1.bf16.msra.mxu1 %v434_v7 }
  0x10   :  { %256 = vmatprep.subr.bf16.mxu0 %v435_v8  ;;  %392 = vmatprep.subr.bf16.mxu1 %v435_v8 }
  0x13   :  { %257 = vmatpush1.bf16.msra.mxu0 %v437_v9  ;;  %408 = vmatpush1.bf16.msra.mxu1 %v437_v9 }
  0x14   :  { %258 = vmatprep.subr.bf16.mxu0 %v438_v10  ;;  %393 = vmatprep.subr.bf16.mxu1 %v438_v10 }
  0x17   :  { %259 = vmatpush1.bf16.msra.mxu0 %v440_v11  ;;  %409 = vmatpush1.bf16.msra.mxu1 %v440_v11 }
  0x18   :  { %260 = vmatprep.subr.bf16.mxu0 %v441_v12  ;;  %394 = vmatprep.subr.bf16.mxu1 %v441_v12 }
  0x19   :  { %7 = vsyncpa [#allocation4], 0  ;;  %280 = vmatprep.mubr.bf16.mxu0 %v473_v13  ;;  %290 = vmatprep.mubr.bf16.mxu1 %v476_v15  ;;  %v446_v17 = vld [vmem:[%s640_s1 + $0x70] ss:$8 sps:$4 sm:$0xff]   ;;  %v447_v18 = vld [vmem:[%s640_s1 + $0x84] ss:$8 sps:$4 sm:$0xff]  }
  0x1a   :  { %v449_v19 = vld [vmem:[%s640_s1 + $0x80] ss:$8 sps:$4 sm:$0xff]   ;;  %v450_v20 = vld [vmem:[%s640_s1 + $0x94] ss:$8 sps:$4 sm:$0xff]   ;;  %v452_v21 = vld [vmem:[%s640_s1 + $0x90] ss:$8 sps:$4 sm:$0xff]  }
  0x1b   :  { %261 = vmatpush1.bf16.msra.mxu0 %v443_v14  ;;  %410 = vmatpush1.bf16.msra.mxu1 %v443_v14  ;;  %v453_v22 = vld [vmem:[%s640_s1 + $0xa4] ss:$8 sps:$4 sm:$0xff]   ;;  %v455_v23 = vld [vmem:[%s640_s1 + $0xa0] ss:$8 sps:$4 sm:$0xff]   ;;  %v456_v24 = vld [vmem:[%s640_s1 + $0xb4] ss:$8 sps:$4 sm:$0xff]  }
  0x1c   :  { %262 = vmatprep.subr.bf16.mxu0 %v444_v16  ;;  %395 = vmatprep.subr.bf16.mxu1 %v444_v16  ;;  %v458_v25 = vld [vmem:[%s640_s1 + $0xb0] ss:$8 sps:$4 sm:$0xff]   ;;  %v459_v26 = vld [vmem:[%s640_s1 + $0xc4] ss:$8 sps:$4 sm:$0xff]   ;;  %v461_v27 = vld [vmem:[%s640_s1 + $0xc0] ss:$8 sps:$4 sm:$0xff]  }
  0x1d   :  { %v462_v28 = vld [vmem:[%s640_s1 + $0xd4] ss:$8 sps:$4 sm:$0xff]   ;;  %v464_v29 = vld [vmem:[%s640_s1 + $0xd0] ss:$8 sps:$4 sm:$0xff]   ;;  %v465_v30 = vld [vmem:[%s640_s1 + $0xe4] ss:$8 sps:$4 sm:$0xff]  }
  0x1e   :  { %v467_v31 = vld [vmem:[%s640_s1 + $0xe0] ss:$8 sps:$4 sm:$0xff]   ;;  %v468_v32 = vld [vmem:[%s640_s1 + $0xf4] ss:$8 sps:$4 sm:$0xff]   ;;  %v470_v33 = vld [vmem:[%s640_s1 + $0xf0] ss:$8 sps:$4 sm:$0xff]  }
  0x1f   :  { %263 = vmatpush1.bf16.msra.mxu0 %v446_v17  ;;  %411 = vmatpush1.bf16.msra.mxu1 %v446_v17  ;;  %v471_v34 = vld [vmem:[%s639_s0] ss:$8 sps:$4 sm:$0xff]   ;;  %v474_v35 = vld [vmem:[%s639_s0 + $0x10] ss:$8 sps:$4 sm:$0xff]   ;;  %s501_s25 = smov [#allocation3]  }
  0x20   :  { %264 = vmatprep.subr.bf16.mxu0 %v447_v18  ;;  %396 = vmatprep.subr.bf16.mxu1 %v447_v18  ;;  %s341_s26 = sshll.u32 %s501_s25, 4  ;;  %s342_s26 = int_to_ptr.vmem [resolvable:$true] %s341_s26 }
  0x21   :  { %s477_s0 = scalar_lea.vmem %s342_s26, 1024  ;;  %p482_p1 = scmp.lt.s32.totalorder %s342_s26, %s342_s26 }
  0x22   :  { %p478_p0 = scmp.ne.s32.totalorder %s342_s26, %s477_s0  ;;  %p483_p2 = scmp.lt.s32.totalorder %s477_s0, %s477_s0 }
  0x23   :  { %265 = vmatpush1.bf16.msra.mxu0 %v449_v19  ;;  %412 = vmatpush1.bf16.msra.mxu1 %v449_v19 }
  0x24   :  { %266 = vmatprep.subr.bf16.mxu0 %v450_v20  ;;  %397 = vmatprep.subr.bf16.mxu1 %v450_v20  ;;  %p484_p3 = por %p483_p2, %p482_p1 }
  0x26   :  { %p485_p4 = pnand %p484_p3, %p478_p0 }
  0x27   :  { %267 = vmatpush1.bf16.msra.mxu0 %v452_v21  ;;  %413 = vmatpush1.bf16.msra.mxu1 %v452_v21 }
  0x28   :  { %268 = vmatprep.subr.bf16.mxu0 %v453_v22  ;;  %398 = vmatprep.subr.bf16.mxu1 %v453_v22 }
  0x2b   :  { %269 = vmatpush1.bf16.msra.mxu0 %v455_v23  ;;  %414 = vmatpush1.bf16.msra.mxu1 %v455_v23 }
  0x2c   :  { %270 = vmatprep.subr.bf16.mxu0 %v456_v24  ;;  %399 = vmatprep.subr.bf16.mxu1 %v456_v24 }
  0x2f   :  { %271 = vmatpush1.bf16.msra.mxu0 %v458_v25  ;;  %415 = vmatpush1.bf16.msra.mxu1 %v458_v25 }
  0x30   :  { %272 = vmatprep.subr.bf16.mxu0 %v459_v26  ;;  %400 = vmatprep.subr.bf16.mxu1 %v459_v26 }
  0x33   :  { %273 = vmatpush1.bf16.msra.mxu0 %v461_v27  ;;  %416 = vmatpush1.bf16.msra.mxu1 %v461_v27 }
  0x34   :  { %274 = vmatprep.subr.bf16.mxu0 %v462_v28  ;;  %401 = vmatprep.subr.bf16.mxu1 %v462_v28 }
  0x37   :  { %275 = vmatpush1.bf16.msra.mxu0 %v464_v29  ;;  %417 = vmatpush1.bf16.msra.mxu1 %v464_v29 }
  0x38   :  { %276 = vmatprep.subr.bf16.mxu0 %v465_v30  ;;  %402 = vmatprep.subr.bf16.mxu1 %v465_v30 }
  0x3b   :  { %277 = vmatpush1.bf16.msra.mxu0 %v467_v31  ;;  %418 = vmatpush1.bf16.msra.mxu1 %v467_v31 }
  0x3c   :  { %278 = vmatprep.subr.bf16.mxu0 %v468_v32  ;;  %403 = vmatprep.subr.bf16.mxu1 %v468_v32 }
  0x3f   :  { %279 = vmatpush1.bf16.msra.mxu0 %v470_v33  ;;  %419 = vmatpush1.bf16.msra.mxu1 %v470_v33 }
  0x42   :  { %281 = vmatmul.mubr.bf16.vlgmr.msra.gmra.mrb[0].mxu0 %v471_v34  ;;  %291 = vmatmul.mubr.bf16.vlgmr.msra.gmra.mrb[0].mxu1 %v474_v35 }
 0x115   :  { %v282_v36 = vpop.f32.mrb[0].mxu0  ;;  %v292_v37 = vpop.f32.mrb[0].mxu1 }
 0x116   :  { %328 = vst [vmem:[#allocation3] sm:$0xff] %v282_v36  ;;  %332 = vst [vmem:[#allocation3 + $0x20] sm:$0xff] %v292_v37  ;;  %v284_v38 = vpop.f32.mrb[1].mxu0  ;;  %v294_v39 = vpop.f32.mrb[1].mxu1 }
 0x117   :  { %329 = vst [vmem:[#allocation3 + $0x8] sm:$0xff] %v284_v38  ;;  %333 = vst [vmem:[#allocation3 + $0x28] sm:$0xff] %v294_v39  ;;  %v286_v40 = vpop.f32.mrb[2].mxu0  ;;  %v296_v41 = vpop.f32.mrb[2].mxu1 }
 0x118   :  { %330 = vst [vmem:[#allocation3 + $0x10] sm:$0xff] %v286_v40  ;;  %334 = vst [vmem:[#allocation3 + $0x30] sm:$0xff] %v296_v41  ;;  %v288_v42 = vpop.f32.mrb[3].mxu0  ;;  %v298_v43 = vpop.f32.mrb[3].mxu1 }
 0x119   :  { %331 = vst [vmem:[#allocation3 + $0x18] sm:$0xff] %v288_v42  ;;  %335 = vst [vmem:[#allocation3 + $0x38] sm:$0xff] %v298_v43 }
 0x11a   :  { %488 = shalt.err (!%p485_p4)
}
 0x11b   :  { %s489_s28 = scalar_lea.hbm %s641_s2, 1024 }
 0x11c   :  { %p490_p5 = scmp.ne.s32.totalorder %s641_s2, %s489_s28  ;;  %p493_p6 = scmp.lt.u32.totalorder %s489_s28, %s641_s2 }
 0x11e   :  { %p495_p7 = pnand %p493_p6, %p490_p5 }
 0x120   :  { %498 = shalt.err (!%p495_p7)
}
 0x121   :  { %s502_s5 = smov 256   ;;  %s503_s6 = smov 16  }
 0x122   :  { %347 = dma.vmem_to_hbm [thread:$0]  %s342_s26, 1024, %s641_s2, [#allocation4], %s502_s5, %s502_s5, %s503_s6  }
 0x123   :  { %499 = dma.done.wait [#allocation4], 1024  }
 0x124   :  { %500 = vsyncadd [#allocation4], 4294966272 }
 0x125   :  { %351 = vsyncpa [#allocation4], 1 }

// kernel: attention_forward.4
= control target key start
LH: loop header
LB: loop body
LE: loop exit
PB: predicated region body
PF: predicated region fallthrough
CT: control target
= control target key end

     0   :  { %s1298_s15 = smov 0   ;;  %s1300_s16 = smov 0   ;;  %s1506_s0 = inlined_call_operand.vmem [shape: bf16[2,16,256], index: 0, kind: input, shape index: {}]   ;;  %s1507_s1 = inlined_call_operand.vmem [shape: bf16[2,2,16,64], index: 1, kind: input, shape index: {}]   ;;  %s1508_s2 = inlined_call_operand.vmem [shape: bf16[2,2,16,64], index: 2, kind: input, shape index: {}]   ;;  %s1509_s3 = inlined_call_operand.vmem [shape: f32[16,16], index: 3, kind: input, shape index: {}]   ;;  %s1510_s4 = inlined_call_operand.vmem [shape: bf16[2,16,256], index: 4, kind: output, shape index: {}]  }
   0x1   :  { %s1302_s17 = smov 0   ;;  %s1304_s18 = smov 0  }
   0x2   :  { %s1306_s19 = smov 0   ;;  %s1308_s20 = smov 0  }
   0x3   :  { %s1310_s21 = smov 0  }
   0x4 LB: > { %s36_s22 = sadd.s32 1, %s1258_s19  ;;  %s40_s23 = sadd.s32 1, %s1262_s20  ;;  %s1266_s21 = sphi %s1310_s21, %s14_s21   ;;  %s1262_s20 = sphi %s1308_s20, %s1517_s20   ;;  %s1258_s19 = sphi %s1306_s19, %s1516_s19   ;;  %s1254_s18 = sphi %s1304_s18, %s1515_s18   ;;  %s1250_s17 = sphi %s1302_s17, %s1514_s17   ;;  %s1246_s16 = sphi %s1300_s16, %s1513_s16   ;;  %s1242_s15 = sphi %s1298_s15, %s1512_s15  }
   0x5   : > { %p38_p0 = scmp.ge.s32.totalorder %s36_s22, 2  ;;  %s1047_s24 = sadd.s32 4294967295, %s1266_s21  }
   0x6   : > { %p58_p1 = scmp.ne.s32.totalorder %s1246_s16, %s1242_s15  ;;  %p59_p2 = scmp.eq.s32.totalorder %s1266_s21, 0 }
   0x7   : > { %s1519_s22 = smov (%p38_p0, %s36_s22), 0  ;;  %s1521_s23 = smov (!%p38_p0, %s40_s23), %s1262_s20 }
   0x8   : > { %p42_p3 = scmp.ge.s32.totalorder %s1521_s23, 2  ;;  %p180_p4 = scmp.eq.s32.totalorder %s1047_s24, 3 }
   0x9   : > { %s47_s25 = ssub.s32 %s1258_s19, %s1519_s22  ;;  %p60_p5 = por %p59_p2, %p58_p1 }
   0xa   : > { %s1523_s23 = smov (%p42_p3, %s1521_s23), 0  ;;  %p1346_p6 = por %p180_p4, %p58_p1 }
   0xb   : > { %s44_s27 = ssub.s32 %s1262_s20, %s1523_s23  ;;  %s51_s29 = sadd.s32 1, %s1246_s16 }
   0xc   : > { %s48_s28 = sor.u32 %s47_s25, %s44_s27  ;;  %p1051_p8 = scmp.ge.s32.totalorder %s1266_s21, 4 }
   0xd   : > { %p49_p7 = scmp.eq.s32.totalorder %s48_s28, 0 }
   0xe   : > { %214 = sbr.rel (%p1051_p8) target bundleno = 28 (0x1c), region = 20 }
   0xf   : > { %s1354_s30 = scalar_select %p49_p7, %s1246_s16, %s51_s29  }
  0x15   : > { %217 = sbr.rel (!%p60_p5) target bundleno = 28 (0x1c), region = 24  ;;  %s219_s5 = sand.u32 (%p60_p5), 1, %s1246_s16  }
  0x16   : > { %s1053_s6 = sshll.u32 (%p60_p5), %s1262_s20, 2  ;;  %s1052_s7 = sshll.u32 (%p60_p5), %s219_s5, 3 }
  0x17   : > { %s226_s8 = sadd.s32 (%p60_p5), %s1258_s19, %s1053_s6  ;;  %s221_s13 = scalar_lea.vmem (%p60_p5), [#allocation5], %s1052_s7 }
  0x18   : > { %s1054_s9 = sshll.u32 (%p60_p5), %s226_s8, 2 }
  0x19   : > { %s228_s12 = scalar_lea.vmem (%p60_p5), %s1506_s0, %s1054_s9 }
  0x1a   : > { %v244_v0 = vld [vmem:[%s228_s12] sm:$0xf] (%p60_p5)  ;;  %v246_v1 = vld [vmem:[%s228_s12 + $0x8] sm:$0xf] (%p60_p5) }
  0x1b   : > { %245 = vst [vmem:[%s221_s13] sm:$0xf] (%p60_p5), %v244_v0  ;;  %247 = vst [vmem:[%s221_s13 + $0x4] sm:$0xf] (%p60_p5), %v246_v1 }
  0x1c PF: > { %p1055_p9 = scmp.ge.s32.totalorder %s1266_s21, 1  ;;  %p307_p10 = scmp.lt.s32.totalorder %s1266_s21, 5 }
  0x1e   : > { %p308_p11 = pnand %p1055_p9, %p307_p10 }
  0x1f   : > { %p374_p12 = scmp.lt.s32.totalorder (!%p308_p11), %s1254_s18, 1  ;;  %p376_p13 = scmp.lt.s32.totalorder (!%p308_p11), %s1250_s17, 1  ;;  %vm425_vm0 = vcmask (!%p308_p11), 523264   ;;  %v1268_v2 = vmov (!%p308_p11), 0.0   ;;  %vm1269_vm1 = vmmov (!%p308_p11), 0   ;;  %vm416_vm2 = vcmask (!%p308_p11), 7168  }
  0x20   : > { %311 = sbr.rel (%p308_p11) target bundleno = 1506 (0x5e2), region = 73  ;;  %1093 = vmatprep.subr.bf16.mxu0 (!%p308_p11), %v1268_v2  ;;  %426 = vst.msk [vmem:[#allocation4] sm:$0xff] (!%p308_p11), %vm425_vm0, %v1268_v2  ;;  %427 = vst.msk [vmem:[#allocation4 + $0x8] sm:$0xff] (!%p308_p11), %vm425_vm0, %v1268_v2  ;;  %1095 = vmatprep.mubr.msk.bf16.mxu0 (!%p308_p11), %vm1269_vm1, %v1268_v2  ;;  %s314_s14 = sand.u32 (!%p308_p11), 1, %s1242_s15   ;;  %v1270_v6 = vmov (!%p308_p11), -inf   ;;  %v436_v8 = vld [vmem:[%s1509_s3] sm:$0xff] (!%p308_p11) }
  0x21   : > { %428 = vst.msk [vmem:[#allocation4 + $0x10] sm:$0xff] (!%p308_p11), %vm425_vm0, %v1268_v2  ;;  %429 = vst.msk [vmem:[#allocation4 + $0x18] sm:$0xff] (!%p308_p11), %vm425_vm0, %v1268_v2  ;;  %1099 = vmatprep.subr.bf16.mxu1 (!%p308_p11), %v1268_v2  ;;  %1101 = vmatprep.mubr.msk.bf16.mxu1 (!%p308_p11), %vm1269_vm1, %v1268_v2  ;;  %s1386_s28 = sshll.u32 (!%p308_p11), %s314_s14, 3  ;;  %vm502_vm3 = vcmask (!%p308_p11), 130048   ;;  %v437_v12 = vld [vmem:[%s1509_s3 + $0x8] sm:$0xff] (!%p308_p11)  ;;  %v1271_v19 = vmov (!%p308_p11), 0  }
  0x22   : > { %s316_s6 = scalar_lea.vmem (!%p308_p11), [#allocation5], %s1386_s28  ;;  %417 = vst.msk [vmem:[#allocation2] sm:$0xff] (!%p308_p11), %vm416_vm2, %v1270_v6  ;;  %418 = vst.msk [vmem:[#allocation2 + $0x8] sm:$0xff] (!%p308_p11), %vm416_vm2, %v1270_v6  ;;  %1178 = vset.pattern.permute.xlu1 (!%p308_p11), %v1271_v19  ;;  %1179 = vset.pattern.permute.xlu0 (!%p308_p11), %v1271_v19  ;;  %s1272_s14 = smov (!%p308_p11), 64  }
  0x23   : > { %v1186_v5 = vld [vmem:[%s316_s6] sm:$0xff] (!%p308_p11)   ;;  %419 = vst.msk [vmem:[#allocation2 + $0x10] sm:$0xff] (!%p308_p11), %vm416_vm2, %v1270_v6  ;;  %420 = vst.msk [vmem:[#allocation2 + $0x18] sm:$0xff] (!%p308_p11), %vm416_vm2, %v1270_v6 }
  0x24   : > { %421 = vst.msk [vmem:[#allocation3] sm:$0xff] (!%p308_p11), %vm416_vm2, %v1268_v2  ;;  %422 = vst.msk [vmem:[#allocation3 + $0x8] sm:$0xff] (!%p308_p11), %vm416_vm2, %v1268_v2 }
  0x25   : > { %423 = vst.msk [vmem:[#allocation3 + $0x10] sm:$0xff] (!%p308_p11), %vm416_vm2, %v1268_v2  ;;  %424 = vst.msk [vmem:[#allocation3 + $0x18] sm:$0xff] (!%p308_p11), %vm416_vm2, %v1268_v2 }
  0x27   : > { %s375_s24 = scalar_select %p374_p12, %s1254_s18, 1 }
  0x28   : > { %s377_s25 = scalar_select %p376_p13, %s1250_s17, 1 }
  0x29   : > { %s1059_s27 = sshll.u32 %s375_s24, 2  ;;  %v1426_v20 = vld [vmem:[#allocation2] sm:$0xff]  ;;  %v501_v23 = vld [vmem:[#allocation2 + $0x8] sm:$0xff] }
  0x2a   : > { %s1058_s29 = sshll.u32 %s377_s25, 1  ;;  %v670_v53 = vld [vmem:[#allocation2 + $0x10] sm:$0xff]  ;;  %v671_v55 = vld [vmem:[#allocation2 + $0x18] sm:$0xff] }
  0x2b   : > { %s1388_s5 = sadd.s32 %s1059_s27, %s1058_s29  ;;  %s371_s29 = scalar_lea.vmem [#allocation6], %s1386_s28 }
  0x2c   : > { %s1060_s7 = sshll.u32 %s1388_s5, 2  ;;  %s1074_s5 = sshll.u32 (%p1346_p6), %s1254_s18, 2 }
  0x2d   : > { %s385_s9 = scalar_lea.vmem %s1507_s1, %s1060_s7  ;;  %s399_s27 = scalar_lea.vmem %s1508_s2, %s1060_s7 }
  0x2e   : > { %v1185_v3 = vld [vmem:[%s385_s9] sm:$0xff]   ;;  %s853_s6 = sadd.s32 (%p1346_p6), %s1250_s17, %s1074_s5 }
  0x2f   : > { %v1398_v4 = vsel %vm425_vm0, %v1185_v3, 0  ;;  %v1187_v28 = vld [vmem:[%s399_s27] sm:$0xff]   ;;  %s1075_s7 = sshll.u32 (%p1346_p6), %s853_s6, 2 }
  0x30   : > { %1094 = vmatpush3.bf16.xpose.msra.mxu0 %v1398_v4  ;;  %1100 = vmatpush3.bf16.msra.mxu1 %v1187_v28  ;;  %s855_s9 = scalar_lea.vmem (%p1346_p6), %s1510_s4, %s1075_s7 }
  0x31   : > { %1111 = vmatprep.subr.bf16.mxu0 %v1268_v2  ;;  %1105 = vmatprep.subr.bf16.mxu1 %v1268_v2 }
  0x37   : > { %1096 = vmatmul.mubr.msk.bf16.vlgmr.msra.gmra.mrb[0].mxu0 %vm425_vm0, %v1186_v5 }
  0x38   : > { %1113 = vmatprep.mubr.msk.bf16.mxu0 %vm1269_vm1, %v1268_v2  ;;  %1112 = vmatpush3.bf16.msra.mxu0 %v1187_v28  ;;  %v703_v28 = vld [vmem:[#allocation3 + $0x10] sm:$0xff] }
 0x10a   : > { %v489_v7 = vpop.f32.mrb[0].mxu0 }
 0x10b   : > { %v496_v9 = vmul.f32 0.125, %v489_v7  ;;  %v1097_v10 = vpop.f32.mrb[1].mxu0 }
 0x10c   : > { %v492_v11 = vpop.f32.mrb[2].mxu0 }
 0x10d   : > { %v497_v13 = vmul.f32 0.125, %v492_v11  ;;  %v1098_v14 = vpop.f32.mrb[3].mxu0  ;;  %v498_v15 = vadd.f32 %v496_v9, %v436_v8 }
 0x10f   : > { %v503_v16 = vsel %vm502_vm3, %v498_v15, -inf  ;;  %v499_v17 = vadd.f32 %v497_v13, %v437_v12 }
 0x110   : > { %504 = vmax.xlane.f32.xlu0 %v503_v16 }
 0x111   : > { %v506_v18 = vsel %vm502_vm3, %v499_v17, -inf }
 0x114   : > { %507 = vmax.xlane.f32.xlu0 %v506_v18 }
 0x12a   : > { %619 = vrot.lane.b32.xlu0 %v1186_v5, %s1272_s14 }
 0x19d   : > { %v505_v21 = vpop.xlane.xlu0 %504 }
 0x19e   : > { %v1429_v22 = vmax.f32 %v1426_v20, %v505_v21  ;;  %v600_v21 = vld [vmem:[#allocation4 + $0x8] sm:$0xff] }
 0x1a0   : > { %v511_v24 = vsub.f32 %v1426_v20, %v1429_v22  ;;  %617 = vst.msk [vmem:[#allocation2] sm:$0xff] %vm416_vm2, %v1429_v22  ;;  %519 = vperm.xlu1 %1178, %v1429_v22  }
 0x1a1   : > { %v508_v25 = vpop.xlane.xlu0 %507 }
 0x1a2   : > { %v510_v26 = vmax.f32 %v501_v23, %v508_v25 }
 0x1a4   : > { %v512_v27 = vsub.f32 %v501_v23, %v510_v26  ;;  %618 = vst.msk [vmem:[#allocation2 + $0x8] sm:$0xff] %vm416_vm2, %v510_v26  ;;  %524 = vperm.xlu1 %1178, %v510_v26  }
 0x1a5   : > { %v620_v38 = vpop.permute.xlu0 %619 }
 0x1a6   : > { %v515_v62 = vmul.f32 1.442695, %v512_v27  ;;  %v513_v27 = vmul.f32 1.442695, %v511_v24 }
 0x21f   : > { %v520_v29 = vpop.permute.xlu1 %519 }
 0x220   : > { %v527_v30 = vsub.f32 %v498_v15, %v520_v29  ;;  %v534_v15 = vld [vmem:[#allocation3 + $0x8] sm:$0xff] }
 0x222   : > { %v529_v31 = vmul.f32 1.442695, %v527_v30 }
 0x223   : > { %v525_v32 = vpop.permute.xlu1 %524 }
 0x224   : > { %v528_v33 = vsub.f32 %v499_v17, %v525_v32  ;;  %1188 = vpow2.f32 %v529_v31  ;;  %v704_v31 = vld [vmem:[#allocation3 + $0x18] sm:$0xff] }
 0x226   : > { %v531_v34 = vmul.f32 1.442695, %v528_v33 }
 0x228   : > { %1190 = vpow2.f32 %v531_v34 }
 0x229   : > { %1192 = vpow2.f32 %v515_v62 }
 0x22e   : > { %v1189_v35 = vpop.eup %1188 }
 0x22f   : > { %v537_v11 = vsel %vm502_vm3, %v1189_v35, 0.0 }
 0x232   : > { %v1191_v36 = vpop.eup %1190 }
 0x233   : > { %v548_v37 = vpack.c.bf16 %v1191_v36, %v1189_v35  ;;  %v540_v61 = vsel %vm502_vm3, %v1191_v36, 0.0  ;;  %v1193_v63 = vpop.eup %1192  ;;  %v533_v36 = vld [vmem:[#allocation3] sm:$0xff] }
 0x234   : > { %v536_v17 = vmul.f32 %v1193_v63, %v534_v15 }
 0x235   : > { %1102 = vmatmul.mubr.msk.bf16.vlgmr.msra.gmra.mrb[0].mxu1 %vm502_vm3, %v548_v37 }
 0x236   : > { %1106 = vmatpush3.bf16.xpose.msra.mxu1 %v1398_v4  ;;  %1107 = vmatprep.mubr.msk.bf16.mxu1 %vm1269_vm1, %v1268_v2 }
 0x23d   : > { %1108 = vmatmul.mubr.msk.bf16.vlgmr.msra.gmra.mrb[4].mxu1 %vm425_vm0, %v620_v38 }
 0x308   : > { %v1448_v39 = vpop.f32.mrb[0].mxu1 }
 0x309   : > { %v1103_v40 = vpop.f32.mrb[1].mxu1 }
 0x30a   : > { %v1450_v41 = vpop.f32.mrb[2].mxu1 }
 0x30b   : > { %v1104_v42 = vpop.f32.mrb[3].mxu1 }
 0x310   : > { %v658_v43 = vpop.f32.mrb[4].mxu1 }
 0x311   : > { %v665_v44 = vmul.f32 0.125, %v658_v43  ;;  %v1109_v45 = vpop.f32.mrb[5].mxu1 }
 0x312   : > { %v661_v46 = vpop.f32.mrb[6].mxu1 }
 0x313   : > { %v666_v47 = vmul.f32 0.125, %v661_v46  ;;  %v1110_v48 = vpop.f32.mrb[7].mxu1  ;;  %v667_v49 = vadd.f32 %v665_v44, %v436_v8 }
 0x314   : > { %v763_v48 = vld [vmem:[#allocation4 + $0x10] sm:$0xff] }
 0x315   : > { %v672_v50 = vsel %vm502_vm3, %v667_v49, -inf  ;;  %v668_v51 = vadd.f32 %v666_v47, %v437_v12 }
 0x316   : > { %673 = vmax.xlane.f32.xlu1 %v672_v50 }
 0x317   : > { %v675_v52 = vsel %vm502_vm3, %v668_v51, -inf }
 0x318   : > { %676 = vmax.xlane.f32.xlu0 %v675_v52 }
 0x3a3   : > { %v674_v54 = vpop.xlane.xlu1 %673 }
 0x3a4   : > { %v678_v56 = vmax.f32 %v670_v53, %v674_v54 }
 0x3a5   : > { %v677_v57 = vpop.xlane.xlu0 %676 }
 0x3a6   : > { %v680_v58 = vsub.f32 %v670_v53, %v678_v56  ;;  %781 = vst.msk [vmem:[#allocation2 + $0x10] sm:$0xff] %vm416_vm2, %v678_v56  ;;  %v679_v59 = vmax.f32 %v671_v55, %v677_v57  ;;  %688 = vperm.xlu1 %1178, %v678_v56  }
 0x3a8   : > { %v681_v60 = vsub.f32 %v671_v55, %v679_v59  ;;  %782 = vst.msk [vmem:[#allocation2 + $0x18] sm:$0xff] %vm416_vm2, %v679_v59  ;;  %693 = vperm.xlu0 %1179, %v679_v59   ;;  %v682_v12 = vmul.f32 1.442695, %v680_v58 }
 0x3aa   : > { %v684_v13 = vmul.f32 1.442695, %v681_v60 }
 0x3c7   : > { %541 = vadd.xlane.f32.xlu0 %v540_v61 }
 0x3dd   : > { %608 = vperm.xlu0 %1179, %v1193_v63  }
 0x425   : > { %v689_v0 = vpop.permute.xlu1 %688 }
 0x426   : > { %v696_v1 = vsub.f32 %v667_v49, %v689_v0  ;;  %v764_v49 = vld [vmem:[#allocation4 + $0x18] sm:$0xff] }
 0x427   : > { %v694_v2 = vpop.permute.xlu0 %693 }
 0x428   : > { %v698_v3 = vmul.f32 1.442695, %v696_v1  ;;  %v697_v4 = vsub.f32 %v668_v51, %v694_v2  ;;  %v599_v1 = vld [vmem:[#allocation4] sm:$0xff] }
 0x42a   : > { %1194 = vpow2.f32 %v698_v3  ;;  %v700_v5 = vmul.f32 1.442695, %v697_v4 }
 0x42c   : > { %1196 = vpow2.f32 %v700_v5 }
 0x42d   : > { %1198 = vpow2.f32 %v682_v12 }
 0x42e   : > { %1200 = vpow2.f32 %v684_v13 }
 0x42f   : > { %1202 = vpow2.f32 %v513_v27 }
 0x434   : > { %v1195_v6 = vpop.eup %1194 }
 0x435   : > { %v707_v7 = vsel %vm502_vm3, %v1195_v6, 0.0 }
 0x436   : > { %v1197_v8 = vpop.eup %1196  ;;  %708 = vadd.xlane.f32.xlu1 %v707_v7 }
 0x437   : > { %v717_v9 = vpack.c.bf16 %v1197_v8, %v1195_v6  ;;  %v710_v10 = vsel %vm502_vm3, %v1197_v8, 0.0  ;;  %v1199_v14 = vpop.eup %1198 }
 0x438   : > { %v1201_v16 = vpop.eup %1200  ;;  %v705_v29 = vmul.f32 %v1199_v14, %v703_v28 }
 0x439   : > { %1114 = vmatmul.mubr.msk.bf16.vlgmr.msra.gmra.mrb[4].mxu0 %vm502_vm3, %v717_v9  ;;  %v706_v33 = vmul.f32 %v1201_v16, %v704_v31  ;;  %v1203_v34 = vpop.eup %1202 }
 0x43a   : > { %711 = vadd.xlane.f32.xlu1 %v710_v10  ;;  %v535_v38 = vmul.f32 %v1203_v34, %v533_v36 }
 0x43e   : > { %538 = vadd.xlane.f32.xlu1 %v537_v11 }
 0x44f   : > { %767 = vperm.xlu1 %1178, %v1199_v14  }
 0x453   : > { %772 = vperm.xlu1 %1178, %v1201_v16  }
 0x454   : > { %v542_v18 = vpop.xlane.xlu0 %541 }
 0x455   : > { %v544_v19 = vadd.f32 %v542_v18, %v536_v17 }
 0x457   : > { %547 = vst.msk [vmem:[#allocation3 + $0x8] sm:$0xff] %vm416_vm2, %v544_v19 }
 0x45c   : > { %v609_v23 = vpop.permute.xlu0 %608 }
 0x45d   : > { %v612_v25 = vmul.f32 %v609_v23, %v600_v21 }
 0x45e   : > { %v787_v43 = vld [vmem:[#allocation3 + $0x8] sm:$0xff] }
 0x45f   : > { %v614_v26 = vadd.f32 %v612_v25, %v1450_v41 }
 0x461   : > { %616 = vst.msk [vmem:[#allocation4 + $0x8] sm:$0xff] %vm425_vm0, %v614_v26 }
 0x468   : > { %v791_v9 = vld [vmem:[#allocation4 + $0x8] sm:$0xff] }
 0x4c3   : > { %v709_v30 = vpop.xlane.xlu1 %708 }
 0x4c4   : > { %v713_v32 = vadd.f32 %v709_v30, %v705_v29 }
 0x4c6   : > { %715 = vst.msk [vmem:[#allocation3 + $0x10] sm:$0xff] %vm416_vm2, %v713_v32 }
 0x4c7   : > { %v712_v35 = vpop.xlane.xlu1 %711 }
 0x4c8   : > { %v714_v37 = vadd.f32 %v712_v35, %v706_v33 }
 0x4ca   : > { %716 = vst.msk [vmem:[#allocation3 + $0x18] sm:$0xff] %vm416_vm2, %v714_v37 }
 0x4cb   : > { %v539_v40 = vpop.xlane.xlu1 %538 }
 0x4cc   : > { %v543_v41 = vadd.f32 %v539_v40, %v535_v38 }
 0x4cd   : > { %v804_v20 = vld [vmem:[#allocation3 + $0x10] sm:$0xff] }
 0x4ce   : > { %546 = vst.msk [vmem:[#allocation3] sm:$0xff] %vm416_vm2, %v543_v41  ;;  %1204 = vrcp.f32 %v804_v20 }
 0x4cf   : > { %v768_v47 = vpop.permute.xlu1 %767 }
 0x4d0   : > { %v775_v51 = vmul.f32 %v768_v47, %v763_v48 }
 0x4d1   : > { %v805_v22 = vld [vmem:[#allocation3 + $0x18] sm:$0xff] }
 0x4d2   : > { %1206 = vrcp.f32 %v805_v22 }
 0x4d3   : > { %v773_v50 = vpop.permute.xlu1 %772 }
 0x4d4   : > { %v776_v53 = vmul.f32 %v773_v50, %v764_v49 }
 0x4d5   : > { %v786_v24 = vld [vmem:[#allocation3] sm:$0xff] }
 0x4d6   : > { %1208 = vrcp.f32 %v786_v24 }
 0x4d7   : > { %1210 = vrcp.f32 %v787_v43 }
 0x4d8   : > { %v1205_v42 = vpop.eup %1204 }
 0x4d9   : > { %812 = vperm.xlu1 %1178, %v1205_v42  }
 0x4dc   : > { %v1207_v44 = vpop.eup %1206 }
 0x4dd   : > { %817 = vperm.xlu1 %1178, %v1207_v44  }
 0x4e0   : > { %v1209_v45 = vpop.eup %1208 }
 0x4e1   : > { %603 = vperm.xlu1 %1178, %v1203_v34   ;;  %v1211_v46 = vpop.eup %1210 }
 0x4e5   : > { %794 = vperm.xlu1 %1178, %v1209_v45  }
 0x4e9   : > { %799 = vperm.xlu1 %1178, %v1211_v46  }
 0x50c   : > { %v755_v52 = vpop.f32.mrb[4].mxu0 }
 0x50d   : > { %v777_v54 = vadd.f32 %v775_v51, %v755_v52  ;;  %v1115_v55 = vpop.f32.mrb[5].mxu0 }
 0x50e   : > { %v758_v56 = vpop.f32.mrb[6].mxu0 }
 0x50f   : > { %779 = vst.msk [vmem:[#allocation4 + $0x10] sm:$0xff] %vm425_vm0, %v777_v54  ;;  %v778_v57 = vadd.f32 %v776_v53, %v758_v56  ;;  %v1116_v58 = vpop.f32.mrb[7].mxu0 }
 0x511   : > { %780 = vst.msk [vmem:[#allocation4 + $0x18] sm:$0xff] %vm425_vm0, %v778_v57 }
 0x516   : > { %v808_v60 = vld [vmem:[#allocation4 + $0x10] sm:$0xff] }
 0x518   : > { %v809_v62 = vld [vmem:[#allocation4 + $0x18] sm:$0xff] }
 0x558   : > { %v813_v59 = vpop.permute.xlu1 %812 }
 0x559   : > { %v820_v63 = vmul.f32 %v813_v59, %v808_v60 }
 0x55c   : > { %v818_v61 = vpop.permute.xlu1 %817 }
 0x55d   : > { %v821_v0 = vmul.f32 %v818_v61, %v809_v62 }
 0x55f   : > { %v1180_v2 = vpack.i.bf16 %v821_v0, %v820_v63 }
 0x560   : > { %v604_v3 = vpop.permute.xlu1 %603 }
 0x561   : > { %v611_v4 = vmul.f32 %v604_v3, %v599_v1  ;;  %1181 = vrot.lane.b32.xlu1 %v1180_v2, %s1272_s14 }
 0x563   : > { %v613_v5 = vadd.f32 %v611_v4, %v1448_v39 }
 0x564   : > { %v795_v6 = vpop.permute.xlu1 %794 }
 0x565   : > { %615 = vst.msk [vmem:[#allocation4] sm:$0xff] %vm425_vm0, %v613_v5 }
 0x568   : > { %v800_v7 = vpop.permute.xlu1 %799 }
 0x569   : > { %v803_v12 = vmul.f32 %v800_v7, %v791_v9 }
 0x56c   : > { %v790_v8 = vld [vmem:[#allocation4] sm:$0xff] }
 0x56d   : > { %v802_v11 = vmul.f32 %v795_v6, %v790_v8 }
 0x5d3   : > { %v1182_v10 = vpop.permute.xlu1 %1181  ;;  %848 = sbr.rel (!%p1346_p6) target bundleno = 1506 (0x5e2), region = 89 }
 0x5d4   : > { %v1184_v13 = vunpack.i.h.bf16 %v1182_v10  ;;  %v1183_v14 = vunpack.i.l.bf16 %v1182_v10 }
 0x5d6   : > { %v831_v15 = vsel %vm425_vm0, %v803_v12, %v1184_v13  ;;  %v830_v16 = vsel %vm425_vm0, %v802_v11, %v1183_v14 }
 0x5d7   : > { %v1083_v17 = vpack.c.bf16 %v831_v15, %v830_v16 }
 0x5d9   : > { %1084 = vst [vmem:[%s371_s29] sm:$0xff] %v1083_v17  }
 0x5e0   : > { %v871_v39 = vld [vmem:[%s371_s29] sm:$0xf]  ;;  %v873_v18 = vld [vmem:[%s371_s29 + $0x4] sm:$0xf] }
 0x5e1   : > { %872 = vst [vmem:[%s855_s9] sm:$0xf] %v871_v39  ;;  %874 = vst [vmem:[%s855_s9 + $0x8] sm:$0xf] %v873_v18 }
 0x5e2 PF: > { %s14_s21 = sadd.s32 1, %s1266_s21   ;;  %s1512_s15 = smov %s1246_s16 }
 0x5e3   : > { %p11_p0 = scmp.ge.s32.totalorder %s14_s21, 6   ;;  %s1513_s16 = smov %s1354_s30 }
 0x5e4   : > { %s1514_s17 = smov %s1258_s19  ;;  %s1515_s18 = smov %s1262_s20 }
 0x5e5   : > { %s1516_s19 = smov %s1519_s22  ;;  %s1517_s20 = smov %s1523_s23 }
 0x5e6   :  { %13 = sbr.rel (!%p11_p0) target bundleno = 4 (0x4), region = 173 }

</bundles_post_ra>
